<compile_context>
chip_gen: v6e
topology: v6e:2x2x1
jax: 0.10.0
libtpu: 0.0.40
codegen_flags: <defaults>
</compile_context>

<pallas_src>
import functools

import jax
import jax.numpy as jnp
import numpy as np
from jax import lax
from jax.experimental import pallas as pl
from jax.experimental.pallas import tpu as pltpu


def _round_up(v, m):
    return ((v + m - 1) // m) * m


# --------------------------- fused kernel ---------------------------
def fused_kernel(g_window,                      # static: graph-window rows (mult of 8)
                 meta_ref,                      # SMEM scalar prefetch: [2*num_tiles] i32
                 batch_ref, first_ref, inv_cnt_ref, x_ref,
                 w1_ref, b1_ref, w2a_ref, w2b_ref, w2c_ref, b2_ref,
                 w3_ref, b3_ref,
                 o_ref,
                 acc_max, acc_sum, acc_first):
    t = pl.program_id(0)
    nt = pl.num_programs(0)
    tile_n = x_ref.shape[0]
    f32 = jnp.float32

    @pl.when(t == 0)
    def _init():
        acc_max[...] = jnp.zeros_like(acc_max)
        acc_sum[...] = jnp.zeros_like(acc_sum)
        acc_first[...] = jnp.zeros_like(acc_first)

    # fc1 + ReLU for this node tile (bf16 MXU feed, f32 accumulation; h never
    # makes an HBM round trip).
    h = jnp.maximum(
        jnp.dot(x_ref[...], w1_ref[...], preferred_element_type=f32)
        + b1_ref[...], 0.0)                                   # [tile_n, H_pad] f32

    # `batch` is sorted, so this tile only touches the contiguous graph-row
    # window [g_lo, g_lo + g_window); g_lo is 8-aligned and precomputed.
    g_lo = pl.multiple_of(meta_ref[2 * t], 8)
    has_first = meta_ref[2 * t + 1]
    win = pl.ds(g_lo, g_window)

    batch_row = batch_ref[...]                                # [1, tile_n] i32
    gids = g_lo + lax.broadcasted_iota(jnp.int32, (g_window, tile_n), 0)
    mask_f = (batch_row == gids).astype(f32)                  # [g_window, tile_n]

    # Running segment max over the window only.  h >= 0 after ReLU, so the
    # 0-masked max and 0-initialized accumulator are exact for non-empty graphs.
    tile_max = jnp.max(mask_f[:, :, None] * h[None, :, :], axis=1)
    acc_max[win, :] = jnp.maximum(acc_max[win, :], tile_max)

    # Running segment sum via a small one-hot MXU matmul; per-graph counts are
    # precomputed in the wrapper, so no per-tile cross-lane count reduce.
    acc_sum[win, :] += jnp.dot(mask_f, h, preferred_element_type=f32)

    # First-node gather: only on tiles that actually contain a graph start.
    @pl.when(has_first > 0)
    def _gather_first():
        node_ids = t * tile_n + lax.broadcasted_iota(
            jnp.int32, (g_window, tile_n), 1)
        first_win = first_ref[win, :]                         # [g_window, 1] i32
        first_oh = (node_ids == first_win).astype(f32)
        acc_first[win, :] += jnp.dot(first_oh, h, preferred_element_type=f32)

    @pl.when(t == nt - 1)
    def _finalize():
        x1 = acc_max[...]
        x2 = acc_sum[...] * inv_cnt_ref[...]                  # mean pool
        x3 = acc_first[...]
        # post_mp layer 1, concat-free: z@W2 == x1@W2[:H] + x2@W2[H:2H] + x3@W2[2H:]
        # TODO(synk): dropout is identity here (inference semantics).
        y = (jnp.dot(x1, w2a_ref[...].astype(f32), preferred_element_type=f32)
             + jnp.dot(x2, w2b_ref[...].astype(f32), preferred_element_type=f32)
             + jnp.dot(x3, w2c_ref[...].astype(f32), preferred_element_type=f32)
             + b2_ref[...])
        logits = (jnp.dot(y, w3_ref[...].astype(f32), preferred_element_type=f32)
                  + b3_ref[...])                              # pad lanes ~ -1e30
        m = jnp.max(logits, axis=1, keepdims=True)
        s = logits - m
        lse = jnp.log(jnp.sum(jnp.exp(s), axis=1, keepdims=True))
        o_ref[...] = s - lse                                  # lane-dense store


# ------------------------------ wrapper ------------------------------
def veracity_pred_forward(x, batch, params, num_graphs, *, tile_n=None,
                          stream_dtype=jnp.bfloat16):
    """Fused decoder forward.  `batch` must be sorted (torch_geometric batch
    order) and concrete: the per-tile graph-window metadata is computed
    host-side with numpy."""
    N, F = x.shape
    H = params["w1"].shape[1]
    M = 3 * H
    O = params["w3"].shape[1]

    LANE, SUB = 128, 8
    NEG = jnp.float32(-1e30)
    F_pad = _round_up(F, LANE)
    H_pad = _round_up(H, LANE)
    M_pad = _round_up(M, LANE)
    O_pad = _round_up(O, LANE)

    # Node-tile size: big tiles amortize the ~0.35us per-grid-step overhead.
    # (v5e/v6e can go to 1024; 512 also fits v7x's 64 MiB VMEM comfortably.)
    if tile_n is None:
        tile_n = _round_up(N, SUB) if N <= 512 else 512
    if N > tile_n:
        assert tile_n % LANE == 0, "multi-tile runs need tile_n % 128 == 0"
    N_pad = _round_up(N, tile_n)
    num_tiles = N_pad // tile_n

    # ---- host-side per-tile metadata: sorted-batch graph windows ----
    batch_np = np.asarray(batch).astype(np.int32)
    assert batch_np.shape == (N,)
    assert np.all(np.diff(batch_np) >= 0), "batch must be sorted by graph id"
    first_idx_np = np.searchsorted(batch_np, np.arange(num_graphs)).astype(np.int32)
    counts_np = np.bincount(batch_np, minlength=num_graphs)[:num_graphs]

    g_lo_list, has_first_list, win_need = [], [], 1
    for t in range(num_tiles):
        s = t * tile_n
        e = min(s + tile_n, N)
        g_min = int(batch_np[s])
        g_hi = int(batch_np[e - 1])
        lo = (g_min // SUB) * SUB
        win_need = max(win_need, g_hi - lo + 1)
        g_lo_list.append(lo)
        has_first_list.append(int(np.any((first_idx_np >= s) & (first_idx_np < e))))

    G_WIN = _round_up(win_need, SUB)               # graph rows touched per tile
    B_pad = max(_round_up(num_graphs, SUB), G_WIN)
    g_lo_np = np.minimum(np.asarray(g_lo_list, np.int32), B_pad - G_WIN)
    meta_np = np.zeros((2 * num_tiles,), np.int32)
    meta_np[0::2] = g_lo_np.astype(np.int32)
    meta_np[1::2] = np.asarray(has_first_list, np.int32)
    meta = jnp.asarray(meta_np)

    # ---- pad inputs / params; x and the big weights stream in stream_dtype ----
    x_p = jnp.zeros((N_pad, F_pad), stream_dtype).at[:N, :F].set(
        jnp.asarray(x, jnp.float32).astype(stream_dtype))
    batch_p = jnp.full((1, N_pad), -1, jnp.int32).at[0, :N].set(
        jnp.asarray(batch_np))
    first_p = jnp.full((B_pad, 1), -1, jnp.int32).at[:num_graphs, 0].set(
        jnp.asarray(first_idx_np))
    inv_cnt_p = jnp.zeros((B_pad, 1), jnp.float32).at[:num_graphs, 0].set(
        jnp.asarray((1.0 / np.maximum(counts_np, 1)).astype(np.float32)))

    def _pad2(w, r, c, dtype):
        w = jnp.asarray(w, jnp.float32)
        return jnp.zeros((r, c), dtype).at[:w.shape[0], :w.shape[1]].set(
            w.astype(dtype))

    w1 = _pad2(params["w1"], F_pad, H_pad, stream_dtype)
    b1 = _pad2(jnp.reshape(jnp.asarray(params["b1"]), (1, H)), 1, H_pad, jnp.float32)
    w2 = jnp.asarray(params["w2"], jnp.float32)
    w2a = _pad2(w2[0:H], H_pad, M_pad, stream_dtype)
    w2b = _pad2(w2[H:2 * H], H_pad, M_pad, stream_dtype)
    w2c = _pad2(w2[2 * H:3 * H], H_pad, M_pad, stream_dtype)
    b2 = _pad2(jnp.reshape(jnp.asarray(params["b2"]), (1, M)), 1, M_pad, jnp.float32)
    w3 = _pad2(params["w3"], M_pad, O_pad, stream_dtype)
    # pad class bias with a large negative so padded lanes vanish in log_softmax
    b3 = jnp.full((1, O_pad), NEG, jnp.float32).at[:, :O].set(
        jnp.reshape(jnp.asarray(params["b3"], jnp.float32), (1, O)))

    # advisory cost estimate so XLA schedules surrounding padding ops sensibly
    def _nbytes(a):
        return int(a.size) * a.dtype.itemsize

    flops = int(2 * N_pad * F_pad * H_pad
                + 2 * 2 * N_pad * G_WIN * H_pad
                + 2 * B_pad * (3 * H_pad * M_pad + M_pad * O_pad))
    bytes_accessed = int(sum(_nbytes(a) for a in
                             (x_p, batch_p, first_p, inv_cnt_p, w1, b1,
                              w2a, w2b, w2c, b2, w3, b3))
                         + B_pad * O_pad * 4)
    cost = pl.CostEstimate(flops=flops, transcendentals=int(B_pad * O_pad),
                           bytes_accessed=bytes_accessed)

    kernel = functools.partial(fused_kernel, G_WIN)

    def _call(single_buffer_invariants):
        # Grid-invariant operands only need one VMEM buffer; default
        # pipelining would double-buffer them (wasted VMEM, worst on v7x).
        inv = (dict(pipeline_mode=pl.Buffered(1))
               if single_buffer_invariants else {})
        grid_spec = pltpu.PrefetchScalarGridSpec(
            num_scalar_prefetch=1,                  # per-tile (g_lo, has_first)
            grid=(num_tiles,),
            in_specs=[
                pl.BlockSpec((1, tile_n), lambda i, m: (0, i)),            # batch ids
                pl.BlockSpec((B_pad, 1), lambda i, m: (0, 0), **inv),      # first idx
                pl.BlockSpec((B_pad, 1), lambda i, m: (0, 0), **inv),      # 1/count
                pl.BlockSpec((tile_n, F_pad), lambda i, m: (i, 0)),        # x tile
                pl.BlockSpec((F_pad, H_pad), lambda i, m: (0, 0), **inv),  # w1
                pl.BlockSpec((1, H_pad), lambda i, m: (0, 0), **inv),      # b1
                pl.BlockSpec((H_pad, M_pad), lambda i, m: (0, 0), **inv),  # w2a
                pl.BlockSpec((H_pad, M_pad), lambda i, m: (0, 0), **inv),  # w2b
                pl.BlockSpec((H_pad, M_pad), lambda i, m: (0, 0), **inv),  # w2c
                pl.BlockSpec((1, M_pad), lambda i, m: (0, 0), **inv),      # b2
                pl.BlockSpec((M_pad, O_pad), lambda i, m: (0, 0), **inv),  # w3
                pl.BlockSpec((1, O_pad), lambda i, m: (0, 0), **inv),      # b3
            ],
            out_specs=pl.BlockSpec((B_pad, O_pad), lambda i, m: (0, 0)),
            scratch_shapes=[
                pltpu.VMEM((B_pad, H_pad), jnp.float32),   # acc_max
                pltpu.VMEM((B_pad, H_pad), jnp.float32),   # acc_sum
                pltpu.VMEM((B_pad, H_pad), jnp.float32),   # acc_first
            ],
        )
        out = pl.pallas_call(
            kernel,
            out_shape=jax.ShapeDtypeStruct((B_pad, O_pad), jnp.float32),
            grid_spec=grid_spec,
            compiler_params=pltpu.CompilerParams(
                dimension_semantics=("arbitrary",),   # node axis is a reduction
                vmem_limit_bytes=32 * 1024 * 1024,    # safe on v5e/v6e/v7x
            ),
            cost_estimate=cost,
        )(meta, batch_p, first_p, inv_cnt_p, x_p, w1, b1,
          w2a, w2b, w2c, b2, w3, b3)
        return jax.block_until_ready(out)

    # TODO(synk): on v7x (2 TensorCores) the node reduction could additionally
    # be split across cores with per-core partial accumulators + a tiny
    # combine; kept single-core here.
    try:
        out_pad = _call(True)
    except Exception:      # fallback if BlockSpec.pipeline_mode is unsupported
        out_pad = _call(False)

    return out_pad[:num_graphs, :O]


# ------------------------- pure-numpy reference -------------------------
def reference_forward(x, batch, params, num_graphs):
    x = np.asarray(x, np.float32)
    batch = np.asarray(batch)
    h = np.maximum(x @ np.asarray(params["w1"]) + np.asarray(params["b1"]), 0.0)
    H = h.shape[1]
    x1 = np.zeros((num_graphs, H), np.float32)
    x2 = np.zeros((num_graphs, H), np.float32)
    x3 = np.zeros((num_graphs, H), np.float32)
    for b in range(num_graphs):
        idx = np.where(batch == b)[0]
        x1[b] = h[idx].max(axis=0)
        x2[b] = h[idx].mean(axis=0)
        x3[b] = h[idx[0]]
    z = np.concatenate([x1, x2, x3], axis=1)
    y = z @ np.asarray(params["w2"]) + np.asarray(params["b2"])
    y = y @ np.asarray(params["w3"]) + np.asarray(params["b3"])
    m = y.max(axis=1, keepdims=True)
    s = y - m
    return s - np.log(np.exp(s).sum(axis=1, keepdims=True))


if __name__ == "__main__":
    # Small shapes consistent with the module's forward pass.
    N = 16           # total nodes across graphs
    input_dim = 8
    hidden_dim = 32
    output_dim = 4
    num_graphs = 2   # number of graphs in the batch

    key = jax.random.PRNGKey(0)
    kx, k1, k2, k3, kb1, kb2, kb3 = jax.random.split(key, 7)

    x = jax.random.normal(kx, (N, input_dim), dtype=jnp.float32)
    # sorted graph assignment, as produced by torch_geometric batching
    batch = jnp.array([0] * 9 + [1] * 7, dtype=jnp.int32)

    scale = 0.1
    params = {
        "w1": scale * jax.random.normal(k1, (input_dim, hidden_dim), jnp.float32),
        "b1": scale * jax.random.normal(kb1, (1, hidden_dim), jnp.float32),
        "w2": scale * jax.random.normal(k2, (3 * hidden_dim, 3 * hidden_dim), jnp.float32),
        "b2": scale * jax.random.normal(kb2, (1, 3 * hidden_dim), jnp.float32),
        "w3": scale * jax.random.normal(k3, (3 * hidden_dim, output_dim), jnp.float32),
        "b3": scale * jax.random.normal(kb3, (1, output_dim), jnp.float32),
    }

    ref = reference_forward(x, batch, params, num_graphs)

    # exact-parity configuration (f32 streaming)
    out_f32 = veracity_pred_forward(x, batch, params, num_graphs,
                                    stream_dtype=jnp.float32)
    out_f32 = jax.block_until_ready(out_f32)
    np.testing.assert_allclose(np.asarray(out_f32), ref, rtol=2e-3, atol=2e-3)

    # default perf configuration (bf16 HBM/MXU streaming, f32 accumulation)
    out_bf16 = veracity_pred_forward(x, batch, params, num_graphs)
    out_bf16 = jax.block_until_ready(out_bf16)
    np.testing.assert_allclose(np.asarray(out_bf16), ref, rtol=3e-2, atol=3e-2)

    print("KERNEL_OK")
</pallas_src>

<mosaic_0001>
module attributes {stable_mosaic.version = 11 : i64} {
  func.func @fused_kernel(%arg0: i32, %arg1: memref<2xi32, #tpu.memory_space<smem>>, %arg2: memref<1x16xi32, #tpu.memory_space<vmem>>, %arg3: memref<8x1xi32, #tpu.memory_space<vmem>>, %arg4: memref<8x1xf32, #tpu.memory_space<vmem>>, %arg5: memref<16x128xf32, #tpu.memory_space<vmem>>, %arg6: memref<128x128xf32, #tpu.memory_space<vmem>>, %arg7: memref<1x128xf32, #tpu.memory_space<vmem>>, %arg8: memref<128x128xf32, #tpu.memory_space<vmem>>, %arg9: memref<128x128xf32, #tpu.memory_space<vmem>>, %arg10: memref<128x128xf32, #tpu.memory_space<vmem>>, %arg11: memref<1x128xf32, #tpu.memory_space<vmem>>, %arg12: memref<128x128xf32, #tpu.memory_space<vmem>>, %arg13: memref<1x128xf32, #tpu.memory_space<vmem>>, %arg14: memref<8x128xf32, #tpu.memory_space<vmem>>, %arg15: memref<8x128xf32, #tpu.memory_space<vmem>>, %arg16: memref<8x128xf32, #tpu.memory_space<vmem>>, %arg17: memref<8x128xf32, #tpu.memory_space<vmem>>) attributes {dimension_semantics = [#tpu.dimension_semantics<arbitrary>], iteration_bounds = array<i64: 1>, scalar_prefetch = 1 : i64, scratch_operands = 3 : i64, tpu.core_type = #tpu.core_type<tc>, window_params = [{transform_indices = @transform_0, window_bounds = array<i64: 1, 16>}, {pipeline_mode = #tpu.pipeline_mode<synchronous>, transform_indices = @transform_1, window_bounds = array<i64: 8, 1>}, {pipeline_mode = #tpu.pipeline_mode<synchronous>, transform_indices = @transform_2, window_bounds = array<i64: 8, 1>}, {transform_indices = @transform_3, window_bounds = array<i64: 16, 128>}, {pipeline_mode = #tpu.pipeline_mode<synchronous>, transform_indices = @transform_4, window_bounds = array<i64: 128, 128>}, {pipeline_mode = #tpu.pipeline_mode<synchronous>, transform_indices = @transform_5, window_bounds = array<i64: 1, 128>}, {pipeline_mode = #tpu.pipeline_mode<synchronous>, transform_indices = @transform_6, window_bounds = array<i64: 128, 128>}, {pipeline_mode = #tpu.pipeline_mode<synchronous>, transform_indices = @transform_7, window_bounds = array<i64: 128, 128>}, {pipeline_mode = #tpu.pipeline_mode<synchronous>, transform_indices = @transform_8, window_bounds = array<i64: 128, 128>}, {pipeline_mode = #tpu.pipeline_mode<synchronous>, transform_indices = @transform_9, window_bounds = array<i64: 1, 128>}, {pipeline_mode = #tpu.pipeline_mode<synchronous>, transform_indices = @transform_10, window_bounds = array<i64: 128, 128>}, {pipeline_mode = #tpu.pipeline_mode<synchronous>, transform_indices = @transform_11, window_bounds = array<i64: 1, 128>}, {pipeline_mode = #tpu.pipeline_mode<synchronous>, transform_indices = @transform_12, window_bounds = array<i64: 8, 128>}]} {
    %c0_i32 = arith.constant 0 : i32
    %0 = arith.cmpi eq, %arg0, %c0_i32 : i32
    %1 = arith.extui %0 : i1 to i32
    %c0_i32_0 = arith.constant 0 : i32
    %2 = arith.cmpi ne, %1, %c0_i32_0 : i32
    scf.if %2 {
      %cst_20 = arith.constant 0.000000e+00 : f32
      %50 = vector.broadcast %cst_20 : f32 to vector<8x128xf32>
      %c0_21 = arith.constant 0 : index
      %c0_22 = arith.constant 0 : index
      %51 = vector.load %arg15[%c0_21, %c0_22] : memref<8x128xf32, #tpu.memory_space<vmem>>, vector<8x128xf32>
      tpu.vector_store %arg15[%c0_21, %c0_22], %50 {strides = array<i32>} : memref<8x128xf32, #tpu.memory_space<vmem>>, vector<8x128xf32>,
      %cst_23 = arith.constant 0.000000e+00 : f32
      %52 = vector.broadcast %cst_23 : f32 to vector<8x128xf32>
      %c0_24 = arith.constant 0 : index
      %c0_25 = arith.constant 0 : index
      %53 = vector.load %arg16[%c0_24, %c0_25] : memref<8x128xf32, #tpu.memory_space<vmem>>, vector<8x128xf32>
      tpu.vector_store %arg16[%c0_24, %c0_25], %52 {strides = array<i32>} : memref<8x128xf32, #tpu.memory_space<vmem>>, vector<8x128xf32>,
      %cst_26 = arith.constant 0.000000e+00 : f32
      %54 = vector.broadcast %cst_26 : f32 to vector<8x128xf32>
      %c0_27 = arith.constant 0 : index
      %c0_28 = arith.constant 0 : index
      %55 = vector.load %arg17[%c0_27, %c0_28] : memref<8x128xf32, #tpu.memory_space<vmem>>, vector<8x128xf32>
      tpu.vector_store %arg17[%c0_27, %c0_28], %54 {strides = array<i32>} : memref<8x128xf32, #tpu.memory_space<vmem>>, vector<8x128xf32>,
    } else {
    }
    %c0 = arith.constant 0 : index
    %c0_1 = arith.constant 0 : index
    %3 = vector.load %arg5[%c0, %c0_1] : memref<16x128xf32, #tpu.memory_space<vmem>>, vector<16x128xf32>
    %c0_2 = arith.constant 0 : index
    %c0_3 = arith.constant 0 : index
    %4 = vector.load %arg6[%c0_2, %c0_3] : memref<128x128xf32, #tpu.memory_space<vmem>>, vector<128x128xf32>
    %cst = arith.constant dense<0.000000e+00> : vector<16x128xf32>
    %5 = tpu.matmul %3, %4, %cst {dimension_numbers = #tpu.dot_dimension_numbers<[1], [0], [0], [1], [0, 0, 1, 1], [], []>} : vector<16x128xf32>, vector<128x128xf32>, vector<16x128xf32> -> vector<16x128xf32>
    %c0_4 = arith.constant 0 : index
    %c0_5 = arith.constant 0 : index
    %6 = vector.load %arg7[%c0_4, %c0_5] : memref<1x128xf32, #tpu.memory_space<vmem>>, vector<1x128xf32>
    %7 = vector.broadcast %6 : vector<1x128xf32> to vector<16x128xf32>
    %8 = arith.addf %5, %7 : vector<16x128xf32>
    %cst_6 = arith.constant 0.000000e+00 : f32
    %9 = vector.broadcast %cst_6 : f32 to vector<16x128xf32>
    %10 = arith.maximumf %8, %9 : vector<16x128xf32>
    %c2_i32 = arith.constant 2 : i32
    %11 = arith.muli %c2_i32, %arg0 : i32
    %12 = arith.index_cast %11 : i32 to index
    %13 = memref.load %arg1[%12] : memref<2xi32, #tpu.memory_space<smem>>
    %14 = tpu.assume_multiple %13, 8 : i32
    %c2_i32_7 = arith.constant 2 : i32
    %15 = arith.muli %c2_i32_7, %arg0 : i32
    %c1_i32 = arith.constant 1 : i32
    %16 = arith.addi %15, %c1_i32 : i32
    %17 = arith.index_cast %16 : i32 to index
    %18 = memref.load %arg1[%17] : memref<2xi32, #tpu.memory_space<smem>>
    %c0_8 = arith.constant 0 : index
    %c0_9 = arith.constant 0 : index
    %19 = vector.load %arg2[%c0_8, %c0_9] : memref<1x16xi32, #tpu.memory_space<vmem>>, vector<1x16xi32>
    %20 = tpu.iota {dimensions = array<i32: 0>} : vector<8x16xi32>
    %21 = vector.broadcast %14 : i32 to vector<8x16xi32>
    %22 = arith.addi %21, %20 : vector<8x16xi32>
    %23 = vector.broadcast %19 : vector<1x16xi32> to vector<8x16xi32>
    %24 = arith.cmpi eq, %23, %22 : vector<8x16xi32>
    %25 = arith.extui %24 : vector<8x16xi1> to vector<8x16xi32>
    %26 = arith.sitofp %25 : vector<8x16xi32> to vector<8x16xf32>
    %27 = vector.shape_cast %26 : vector<8x16xf32> to vector<8x16x1xf32>
    %28 = vector.shape_cast %10 : vector<16x128xf32> to vector<1x16x128xf32>
    %29 = vector.broadcast %27 : vector<8x16x1xf32> to vector<8x16x128xf32>
    %30 = vector.broadcast %28 : vector<1x16x128xf32> to vector<8x16x128xf32>
    %31 = arith.mulf %29, %30 : vector<8x16x128xf32>
    %cst_10 = arith.constant dense<0xFF800000> : vector<8x128xf32>
    %32 = vector.multi_reduction <maximumf>, %31, %cst_10 [1] : vector<8x16x128xf32> to vector<8x128xf32>
    %33 = arith.index_cast %14 : i32 to index
    %c0_11 = arith.constant 0 : index
    %34 = vector.load %arg15[%33, %c0_11] : memref<8x128xf32, #tpu.memory_space<vmem>>, vector<8x128xf32>
    %35 = arith.maximumf %34, %32 : vector<8x128xf32>
    %36 = arith.index_cast %14 : i32 to index
    %c0_12 = arith.constant 0 : index
    %37 = vector.load %arg15[%36, %c0_12] : memref<8x128xf32, #tpu.memory_space<vmem>>, vector<8x128xf32>
    tpu.vector_store %arg15[%36, %c0_12], %35 {strides = array<i32>} : memref<8x128xf32, #tpu.memory_space<vmem>>, vector<8x128xf32>,
    %38 = arith.index_cast %14 : i32 to index
    %c0_13 = arith.constant 0 : index
    %39 = vector.load %arg16[%38, %c0_13] : memref<8x128xf32, #tpu.memory_space<vmem>>, vector<8x128xf32>
    %cst_14 = arith.constant dense<0.000000e+00> : vector<8x128xf32>
    %40 = tpu.matmul %26, %10, %cst_14 {dimension_numbers = #tpu.dot_dimension_numbers<[1], [0], [0], [1], [0, 0, 1, 1], [], []>} : vector<8x16xf32>, vector<16x128xf32>, vector<8x128xf32> -> vector<8x128xf32>
    %41 = arith.addf %39, %40 : vector<8x128xf32>
    %42 = arith.index_cast %14 : i32 to index
    %c0_15 = arith.constant 0 : index
    %43 = vector.load %arg16[%42, %c0_15] : memref<8x128xf32, #tpu.memory_space<vmem>>, vector<8x128xf32>
    tpu.vector_store %arg16[%42, %c0_15], %41 {strides = array<i32>} : memref<8x128xf32, #tpu.memory_space<vmem>>, vector<8x128xf32>,
    %c0_i32_16 = arith.constant 0 : i32
    %44 = arith.cmpi sgt, %18, %c0_i32_16 : i32
    %45 = arith.extui %44 : i1 to i32
    %c0_i32_17 = arith.constant 0 : i32
    %46 = arith.cmpi ne, %45, %c0_i32_17 : i32
    scf.if %46 {
      %c16_i32 = arith.constant 16 : i32
      %50 = arith.muli %arg0, %c16_i32 : i32
      %51 = tpu.iota {dimensions = array<i32: 1>} : vector<8x16xi32>
      %52 = vector.broadcast %50 : i32 to vector<8x16xi32>
      %53 = arith.addi %52, %51 : vector<8x16xi32>
      %54 = arith.index_cast %14 : i32 to index
      %c0_20 = arith.constant 0 : index
      %55 = vector.load %arg3[%54, %c0_20] : memref<8x1xi32, #tpu.memory_space<vmem>>, vector<8x1xi32>
      %56 = vector.broadcast %55 : vector<8x1xi32> to vector<8x16xi32>
      %57 = arith.cmpi eq, %53, %56 : vector<8x16xi32>
      %58 = arith.extui %57 : vector<8x16xi1> to vector<8x16xi32>
      %59 = arith.sitofp %58 : vector<8x16xi32> to vector<8x16xf32>
      %60 = arith.index_cast %14 : i32 to index
      %c0_21 = arith.constant 0 : index
      %61 = vector.load %arg17[%60, %c0_21] : memref<8x128xf32, #tpu.memory_space<vmem>>, vector<8x128xf32>
      %cst_22 = arith.constant dense<0.000000e+00> : vector<8x128xf32>
      %62 = tpu.matmul %59, %10, %cst_22 {dimension_numbers = #tpu.dot_dimension_numbers<[1], [0], [0], [1], [0, 0, 1, 1], [], []>} : vector<8x16xf32>, vector<16x128xf32>, vector<8x128xf32> -> vector<8x128xf32>
      %63 = arith.addf %61, %62 : vector<8x128xf32>
      %64 = arith.index_cast %14 : i32 to index
      %c0_23 = arith.constant 0 : index
      %65 = vector.load %arg17[%64, %c0_23] : memref<8x128xf32, #tpu.memory_space<vmem>>, vector<8x128xf32>
      tpu.vector_store %arg17[%64, %c0_23], %63 {strides = array<i32>} : memref<8x128xf32, #tpu.memory_space<vmem>>, vector<8x128xf32>,
    } else {
    }
    %c0_i32_18 = arith.constant 0 : i32
    %47 = arith.cmpi eq, %arg0, %c0_i32_18 : i32
    %48 = arith.extui %47 : i1 to i32
    %c0_i32_19 = arith.constant 0 : i32
    %49 = arith.cmpi ne, %48, %c0_i32_19 : i32
    scf.if %49 {
      %c0_20 = arith.constant 0 : index
      %c0_21 = arith.constant 0 : index
      %50 = vector.load %arg15[%c0_20, %c0_21] : memref<8x128xf32, #tpu.memory_space<vmem>>, vector<8x128xf32>
      %c0_22 = arith.constant 0 : index
      %c0_23 = arith.constant 0 : index
      %51 = vector.load %arg16[%c0_22, %c0_23] : memref<8x128xf32, #tpu.memory_space<vmem>>, vector<8x128xf32>
      %c0_24 = arith.constant 0 : index
      %c0_25 = arith.constant 0 : index
      %52 = vector.load %arg4[%c0_24, %c0_25] : memref<8x1xf32, #tpu.memory_space<vmem>>, vector<8x1xf32>
      %53 = vector.broadcast %52 : vector<8x1xf32> to vector<8x128xf32>
      %54 = arith.mulf %51, %53 : vector<8x128xf32>
      %c0_26 = arith.constant 0 : index
      %c0_27 = arith.constant 0 : index
      %55 = vector.load %arg17[%c0_26, %c0_27] : memref<8x128xf32, #tpu.memory_space<vmem>>, vector<8x128xf32>
      %c0_28 = arith.constant 0 : index
      %c0_29 = arith.constant 0 : index
      %56 = vector.load %arg8[%c0_28, %c0_29] : memref<128x128xf32, #tpu.memory_space<vmem>>, vector<128x128xf32>
      %cst_30 = arith.constant dense<0.000000e+00> : vector<8x128xf32>
      %57 = tpu.matmul %50, %56, %cst_30 {dimension_numbers = #tpu.dot_dimension_numbers<[1], [0], [0], [1], [0, 0, 1, 1], [], []>} : vector<8x128xf32>, vector<128x128xf32>, vector<8x128xf32> -> vector<8x128xf32>
      %c0_31 = arith.constant 0 : index
      %c0_32 = arith.constant 0 : index
      %58 = vector.load %arg9[%c0_31, %c0_32] : memref<128x128xf32, #tpu.memory_space<vmem>>, vector<128x128xf32>
      %cst_33 = arith.constant dense<0.000000e+00> : vector<8x128xf32>
      %59 = tpu.matmul %54, %58, %cst_33 {dimension_numbers = #tpu.dot_dimension_numbers<[1], [0], [0], [1], [0, 0, 1, 1], [], []>} : vector<8x128xf32>, vector<128x128xf32>, vector<8x128xf32> -> vector<8x128xf32>
      %60 = arith.addf %57, %59 : vector<8x128xf32>
      %c0_34 = arith.constant 0 : index
      %c0_35 = arith.constant 0 : index
      %61 = vector.load %arg10[%c0_34, %c0_35] : memref<128x128xf32, #tpu.memory_space<vmem>>, vector<128x128xf32>
      %cst_36 = arith.constant dense<0.000000e+00> : vector<8x128xf32>
      %62 = tpu.matmul %55, %61, %cst_36 {dimension_numbers = #tpu.dot_dimension_numbers<[1], [0], [0], [1], [0, 0, 1, 1], [], []>} : vector<8x128xf32>, vector<128x128xf32>, vector<8x128xf32> -> vector<8x128xf32>
      %63 = arith.addf %60, %62 : vector<8x128xf32>
      %c0_37 = arith.constant 0 : index
      %c0_38 = arith.constant 0 : index
      %64 = vector.load %arg11[%c0_37, %c0_38] : memref<1x128xf32, #tpu.memory_space<vmem>>, vector<1x128xf32>
      %65 = vector.broadcast %64 : vector<1x128xf32> to vector<8x128xf32>
      %66 = arith.addf %63, %65 : vector<8x128xf32>
      %c0_39 = arith.constant 0 : index
      %c0_40 = arith.constant 0 : index
      %67 = vector.load %arg12[%c0_39, %c0_40] : memref<128x128xf32, #tpu.memory_space<vmem>>, vector<128x128xf32>
      %cst_41 = arith.constant dense<0.000000e+00> : vector<8x128xf32>
      %68 = tpu.matmul %66, %67, %cst_41 {dimension_numbers = #tpu.dot_dimension_numbers<[1], [0], [0], [1], [0, 0, 1, 1], [], []>} : vector<8x128xf32>, vector<128x128xf32>, vector<8x128xf32> -> vector<8x128xf32>
      %c0_42 = arith.constant 0 : index
      %c0_43 = arith.constant 0 : index
      %69 = vector.load %arg13[%c0_42, %c0_43] : memref<1x128xf32, #tpu.memory_space<vmem>>, vector<1x128xf32>
      %70 = vector.broadcast %69 : vector<1x128xf32> to vector<8x128xf32>
      %71 = arith.addf %68, %70 : vector<8x128xf32>
      %cst_44 = arith.constant dense<0xFF800000> : vector<8xf32>
      %72 = vector.multi_reduction <maximumf>, %71, %cst_44 [1] : vector<8x128xf32> to vector<8xf32>
      %73 = vector.shape_cast %72 : vector<8xf32> to vector<8x1xf32>
      %74 = vector.broadcast %73 : vector<8x1xf32> to vector<8x128xf32>
      %75 = arith.subf %71, %74 : vector<8x128xf32>
      %76 = math.exp %75 : vector<8x128xf32>
      %cst_45 = arith.constant dense<0.000000e+00> : vector<8xf32>
      %77 = vector.multi_reduction <add>, %76, %cst_45 [1] : vector<8x128xf32> to vector<8xf32>
      %78 = vector.shape_cast %77 : vector<8xf32> to vector<8x1xf32>
      %79 = math.log %78 : vector<8x1xf32>
      %80 = vector.broadcast %79 : vector<8x1xf32> to vector<8x128xf32>
      %81 = arith.subf %75, %80 : vector<8x128xf32>
      %c0_46 = arith.constant 0 : index
      %c0_47 = arith.constant 0 : index
      %82 = vector.load %arg14[%c0_46, %c0_47] : memref<8x128xf32, #tpu.memory_space<vmem>>, vector<8x128xf32>
      tpu.vector_store %arg14[%c0_46, %c0_47], %81 {strides = array<i32>} : memref<8x128xf32, #tpu.memory_space<vmem>>, vector<8x128xf32>,
    } else {
    }
    return
  }
  func.func @transform_0(%arg0: i32, %arg1: memref<2xi32, #tpu.memory_space<smem>>) -> (i32, i32) {
    %c0_i32 = arith.constant 0 : i32
    %c0_i32_0 = arith.constant 0 : i32
    return %c0_i32, %arg0 : i32, i32
  }
  func.func @transform_1(%arg0: i32, %arg1: memref<2xi32, #tpu.memory_space<smem>>) -> (i32, i32) {
    %c0_i32 = arith.constant 0 : i32
    %c0_i32_0 = arith.constant 0 : i32
    %c0_i32_1 = arith.constant 0 : i32
    return %c0_i32, %c0_i32_0 : i32, i32
  }
  func.func @transform_2(%arg0: i32, %arg1: memref<2xi32, #tpu.memory_space<smem>>) -> (i32, i32) {
    %c0_i32 = arith.constant 0 : i32
    %c0_i32_0 = arith.constant 0 : i32
    %c0_i32_1 = arith.constant 0 : i32
    return %c0_i32, %c0_i32_0 : i32, i32
  }
  func.func @transform_3(%arg0: i32, %arg1: memref<2xi32, #tpu.memory_space<smem>>) -> (i32, i32) {
    %c0_i32 = arith.constant 0 : i32
    %c0_i32_0 = arith.constant 0 : i32
    return %arg0, %c0_i32 : i32, i32
  }
  func.func @transform_4(%arg0: i32, %arg1: memref<2xi32, #tpu.memory_space<smem>>) -> (i32, i32) {
    %c0_i32 = arith.constant 0 : i32
    %c0_i32_0 = arith.constant 0 : i32
    %c0_i32_1 = arith.constant 0 : i32
    return %c0_i32, %c0_i32_0 : i32, i32
  }
  func.func @transform_5(%arg0: i32, %arg1: memref<2xi32, #tpu.memory_space<smem>>) -> (i32, i32) {
    %c0_i32 = arith.constant 0 : i32
    %c0_i32_0 = arith.constant 0 : i32
    %c0_i32_1 = arith.constant 0 : i32
    return %c0_i32, %c0_i32_0 : i32, i32
  }
  func.func @transform_6(%arg0: i32, %arg1: memref<2xi32, #tpu.memory_space<smem>>) -> (i32, i32) {
    %c0_i32 = arith.constant 0 : i32
    %c0_i32_0 = arith.constant 0 : i32
    %c0_i32_1 = arith.constant 0 : i32
    return %c0_i32, %c0_i32_0 : i32, i32
  }
  func.func @transform_7(%arg0: i32, %arg1: memref<2xi32, #tpu.memory_space<smem>>) -> (i32, i32) {
    %c0_i32 = arith.constant 0 : i32
    %c0_i32_0 = arith.constant 0 : i32
    %c0_i32_1 = arith.constant 0 : i32
    return %c0_i32, %c0_i32_0 : i32, i32
  }
  func.func @transform_8(%arg0: i32, %arg1: memref<2xi32, #tpu.memory_space<smem>>) -> (i32, i32) {
    %c0_i32 = arith.constant 0 : i32
    %c0_i32_0 = arith.constant 0 : i32
    %c0_i32_1 = arith.constant 0 : i32
    return %c0_i32, %c0_i32_0 : i32, i32
  }
  func.func @transform_9(%arg0: i32, %arg1: memref<2xi32, #tpu.memory_space<smem>>) -> (i32, i32) {
    %c0_i32 = arith.constant 0 : i32
    %c0_i32_0 = arith.constant 0 : i32
    %c0_i32_1 = arith.constant 0 : i32
    return %c0_i32, %c0_i32_0 : i32, i32
  }
  func.func @transform_10(%arg0: i32, %arg1: memref<2xi32, #tpu.memory_space<smem>>) -> (i32, i32) {
    %c0_i32 = arith.constant 0 : i32
    %c0_i32_0 = arith.constant 0 : i32
    %c0_i32_1 = arith.constant 0 : i32
    return %c0_i32, %c0_i32_0 : i32, i32
  }
  func.func @transform_11(%arg0: i32, %arg1: memref<2xi32, #tpu.memory_space<smem>>) -> (i32, i32) {
    %c0_i32 = arith.constant 0 : i32
    %c0_i32_0 = arith.constant 0 : i32
    %c0_i32_1 = arith.constant 0 : i32
    return %c0_i32, %c0_i32_0 : i32, i32
  }
  func.func @transform_12(%arg0: i32, %arg1: memref<2xi32, #tpu.memory_space<smem>>) -> (i32, i32) {
    %c0_i32 = arith.constant 0 : i32
    %c0_i32_0 = arith.constant 0 : i32
    %c0_i32_1 = arith.constant 0 : i32
    return %c0_i32, %c0_i32_0 : i32, i32
  }
}

module attributes {stable_mosaic.version = 11 : i64} {
  func.func @fused_kernel(%arg0: i32, %arg1: memref<2xi32, #tpu.memory_space<smem>>, %arg2: memref<1x16xi32, #tpu.memory_space<vmem>>, %arg3: memref<8x1xi32, #tpu.memory_space<vmem>>, %arg4: memref<8x1xf32, #tpu.memory_space<vmem>>, %arg5: memref<16x128xf32, #tpu.memory_space<vmem>>, %arg6: memref<128x128xf32, #tpu.memory_space<vmem>>, %arg7: memref<1x128xf32, #tpu.memory_space<vmem>>, %arg8: memref<128x128xf32, #tpu.memory_space<vmem>>, %arg9: memref<128x128xf32, #tpu.memory_space<vmem>>, %arg10: memref<128x128xf32, #tpu.memory_space<vmem>>, %arg11: memref<1x128xf32, #tpu.memory_space<vmem>>, %arg12: memref<128x128xf32, #tpu.memory_space<vmem>>, %arg13: memref<1x128xf32, #tpu.memory_space<vmem>>, %arg14: memref<8x128xf32, #tpu.memory_space<vmem>>, %arg15: memref<8x128xf32, #tpu.memory_space<vmem>>, %arg16: memref<8x128xf32, #tpu.memory_space<vmem>>, %arg17: memref<8x128xf32, #tpu.memory_space<vmem>>) attributes {dimension_semantics = [#tpu.dimension_semantics<arbitrary>], iteration_bounds = array<i64: 1>, scalar_prefetch = 1 : i64, scratch_operands = 3 : i64, tpu.core_type = #tpu.core_type<tc>, window_params = [{transform_indices = @transform_0, window_bounds = array<i64: 1, 16>}, {pipeline_mode = #tpu.pipeline_mode<synchronous>, transform_indices = @transform_1, window_bounds = array<i64: 8, 1>}, {pipeline_mode = #tpu.pipeline_mode<synchronous>, transform_indices = @transform_2, window_bounds = array<i64: 8, 1>}, {transform_indices = @transform_3, window_bounds = array<i64: 16, 128>}, {pipeline_mode = #tpu.pipeline_mode<synchronous>, transform_indices = @transform_4, window_bounds = array<i64: 128, 128>}, {pipeline_mode = #tpu.pipeline_mode<synchronous>, transform_indices = @transform_5, window_bounds = array<i64: 1, 128>}, {pipeline_mode = #tpu.pipeline_mode<synchronous>, transform_indices = @transform_6, window_bounds = array<i64: 128, 128>}, {pipeline_mode = #tpu.pipeline_mode<synchronous>, transform_indices = @transform_7, window_bounds = array<i64: 128, 128>}, {pipeline_mode = #tpu.pipeline_mode<synchronous>, transform_indices = @transform_8, window_bounds = array<i64: 128, 128>}, {pipeline_mode = #tpu.pipeline_mode<synchronous>, transform_indices = @transform_9, window_bounds = array<i64: 1, 128>}, {pipeline_mode = #tpu.pipeline_mode<synchronous>, transform_indices = @transform_10, window_bounds = array<i64: 128, 128>}, {pipeline_mode = #tpu.pipeline_mode<synchronous>, transform_indices = @transform_11, window_bounds = array<i64: 1, 128>}, {pipeline_mode = #tpu.pipeline_mode<synchronous>, transform_indices = @transform_12, window_bounds = array<i64: 8, 128>}]} {
    %c0_i32 = arith.constant 0 : i32
    %0 = arith.cmpi eq, %arg0, %c0_i32 : i32
    %1 = arith.extui %0 : i1 to i32
    %c0_i32_0 = arith.constant 0 : i32
    %2 = arith.cmpi ne, %1, %c0_i32_0 : i32
    scf.if %2 {
      %cst_20 = arith.constant 0.000000e+00 : f32
      %50 = vector.broadcast %cst_20 : f32 to vector<8x128xf32>
      %c0_21 = arith.constant 0 : index
      %c0_22 = arith.constant 0 : index
      %51 = vector.load %arg15[%c0_21, %c0_22] : memref<8x128xf32, #tpu.memory_space<vmem>>, vector<8x128xf32>
      tpu.vector_store %arg15[%c0_21, %c0_22], %50 {strides = array<i32>} : memref<8x128xf32, #tpu.memory_space<vmem>>, vector<8x128xf32>,
      %cst_23 = arith.constant 0.000000e+00 : f32
      %52 = vector.broadcast %cst_23 : f32 to vector<8x128xf32>
      %c0_24 = arith.constant 0 : index
      %c0_25 = arith.constant 0 : index
      %53 = vector.load %arg16[%c0_24, %c0_25] : memref<8x128xf32, #tpu.memory_space<vmem>>, vector<8x128xf32>
      tpu.vector_store %arg16[%c0_24, %c0_25], %52 {strides = array<i32>} : memref<8x128xf32, #tpu.memory_space<vmem>>, vector<8x128xf32>,
      %cst_26 = arith.constant 0.000000e+00 : f32
      %54 = vector.broadcast %cst_26 : f32 to vector<8x128xf32>
      %c0_27 = arith.constant 0 : index
      %c0_28 = arith.constant 0 : index
      %55 = vector.load %arg17[%c0_27, %c0_28] : memref<8x128xf32, #tpu.memory_space<vmem>>, vector<8x128xf32>
      tpu.vector_store %arg17[%c0_27, %c0_28], %54 {strides = array<i32>} : memref<8x128xf32, #tpu.memory_space<vmem>>, vector<8x128xf32>,
    } else {
    }
    %c0 = arith.constant 0 : index
    %c0_1 = arith.constant 0 : index
    %3 = vector.load %arg5[%c0, %c0_1] : memref<16x128xf32, #tpu.memory_space<vmem>>, vector<16x128xf32>
    %c0_2 = arith.constant 0 : index
    %c0_3 = arith.constant 0 : index
    %4 = vector.load %arg6[%c0_2, %c0_3] : memref<128x128xf32, #tpu.memory_space<vmem>>, vector<128x128xf32>
    %cst = arith.constant dense<0.000000e+00> : vector<16x128xf32>
    %5 = tpu.matmul %3, %4, %cst {dimension_numbers = #tpu.dot_dimension_numbers<[1], [0], [0], [1], [0, 0, 1, 1], [], []>} : vector<16x128xf32>, vector<128x128xf32>, vector<16x128xf32> -> vector<16x128xf32>
    %c0_4 = arith.constant 0 : index
    %c0_5 = arith.constant 0 : index
    %6 = vector.load %arg7[%c0_4, %c0_5] : memref<1x128xf32, #tpu.memory_space<vmem>>, vector<1x128xf32>
    %7 = vector.broadcast %6 : vector<1x128xf32> to vector<16x128xf32>
    %8 = arith.addf %5, %7 : vector<16x128xf32>
    %cst_6 = arith.constant 0.000000e+00 : f32
    %9 = vector.broadcast %cst_6 : f32 to vector<16x128xf32>
    %10 = arith.maximumf %8, %9 : vector<16x128xf32>
    %c2_i32 = arith.constant 2 : i32
    %11 = arith.muli %c2_i32, %arg0 : i32
    %12 = arith.index_cast %11 : i32 to index
    %13 = memref.load %arg1[%12] : memref<2xi32, #tpu.memory_space<smem>>
    %14 = tpu.assume_multiple %13, 8 : i32
    %c2_i32_7 = arith.constant 2 : i32
    %15 = arith.muli %c2_i32_7, %arg0 : i32
    %c1_i32 = arith.constant 1 : i32
    %16 = arith.addi %15, %c1_i32 : i32
    %17 = arith.index_cast %16 : i32 to index
    %18 = memref.load %arg1[%17] : memref<2xi32, #tpu.memory_space<smem>>
    %c0_8 = arith.constant 0 : index
    %c0_9 = arith.constant 0 : index
    %19 = vector.load %arg2[%c0_8, %c0_9] : memref<1x16xi32, #tpu.memory_space<vmem>>, vector<1x16xi32>
    %20 = tpu.iota {dimensions = array<i32: 0>} : vector<8x16xi32>
    %21 = vector.broadcast %14 : i32 to vector<8x16xi32>
    %22 = arith.addi %21, %20 : vector<8x16xi32>
    %23 = vector.broadcast %19 : vector<1x16xi32> to vector<8x16xi32>
    %24 = arith.cmpi eq, %23, %22 : vector<8x16xi32>
    %25 = arith.extui %24 : vector<8x16xi1> to vector<8x16xi32>
    %26 = arith.sitofp %25 : vector<8x16xi32> to vector<8x16xf32>
    %27 = vector.shape_cast %26 : vector<8x16xf32> to vector<8x16x1xf32>
    %28 = vector.shape_cast %10 : vector<16x128xf32> to vector<1x16x128xf32>
    %29 = vector.broadcast %27 : vector<8x16x1xf32> to vector<8x16x128xf32>
    %30 = vector.broadcast %28 : vector<1x16x128xf32> to vector<8x16x128xf32>
    %31 = arith.mulf %29, %30 : vector<8x16x128xf32>
    %cst_10 = arith.constant dense<0xFF800000> : vector<8x128xf32>
    %32 = vector.multi_reduction <maximumf>, %31, %cst_10 [1] : vector<8x16x128xf32> to vector<8x128xf32>
    %33 = arith.index_cast %14 : i32 to index
    %c0_11 = arith.constant 0 : index
    %34 = vector.load %arg15[%33, %c0_11] : memref<8x128xf32, #tpu.memory_space<vmem>>, vector<8x128xf32>
    %35 = arith.maximumf %34, %32 : vector<8x128xf32>
    %36 = arith.index_cast %14 : i32 to index
    %c0_12 = arith.constant 0 : index
    %37 = vector.load %arg15[%36, %c0_12] : memref<8x128xf32, #tpu.memory_space<vmem>>, vector<8x128xf32>
    tpu.vector_store %arg15[%36, %c0_12], %35 {strides = array<i32>} : memref<8x128xf32, #tpu.memory_space<vmem>>, vector<8x128xf32>,
    %38 = arith.index_cast %14 : i32 to index
    %c0_13 = arith.constant 0 : index
    %39 = vector.load %arg16[%38, %c0_13] : memref<8x128xf32, #tpu.memory_space<vmem>>, vector<8x128xf32>
    %cst_14 = arith.constant dense<0.000000e+00> : vector<8x128xf32>
    %40 = tpu.matmul %26, %10, %cst_14 {dimension_numbers = #tpu.dot_dimension_numbers<[1], [0], [0], [1], [0, 0, 1, 1], [], []>} : vector<8x16xf32>, vector<16x128xf32>, vector<8x128xf32> -> vector<8x128xf32>
    %41 = arith.addf %39, %40 : vector<8x128xf32>
    %42 = arith.index_cast %14 : i32 to index
    %c0_15 = arith.constant 0 : index
    %43 = vector.load %arg16[%42, %c0_15] : memref<8x128xf32, #tpu.memory_space<vmem>>, vector<8x128xf32>
    tpu.vector_store %arg16[%42, %c0_15], %41 {strides = array<i32>} : memref<8x128xf32, #tpu.memory_space<vmem>>, vector<8x128xf32>,
    %c0_i32_16 = arith.constant 0 : i32
    %44 = arith.cmpi sgt, %18, %c0_i32_16 : i32
    %45 = arith.extui %44 : i1 to i32
    %c0_i32_17 = arith.constant 0 : i32
    %46 = arith.cmpi ne, %45, %c0_i32_17 : i32
    scf.if %46 {
      %c16_i32 = arith.constant 16 : i32
      %50 = arith.muli %arg0, %c16_i32 : i32
      %51 = tpu.iota {dimensions = array<i32: 1>} : vector<8x16xi32>
      %52 = vector.broadcast %50 : i32 to vector<8x16xi32>
      %53 = arith.addi %52, %51 : vector<8x16xi32>
      %54 = arith.index_cast %14 : i32 to index
      %c0_20 = arith.constant 0 : index
      %55 = vector.load %arg3[%54, %c0_20] : memref<8x1xi32, #tpu.memory_space<vmem>>, vector<8x1xi32>
      %56 = vector.broadcast %55 : vector<8x1xi32> to vector<8x16xi32>
      %57 = arith.cmpi eq, %53, %56 : vector<8x16xi32>
      %58 = arith.extui %57 : vector<8x16xi1> to vector<8x16xi32>
      %59 = arith.sitofp %58 : vector<8x16xi32> to vector<8x16xf32>
      %60 = arith.index_cast %14 : i32 to index
      %c0_21 = arith.constant 0 : index
      %61 = vector.load %arg17[%60, %c0_21] : memref<8x128xf32, #tpu.memory_space<vmem>>, vector<8x128xf32>
      %cst_22 = arith.constant dense<0.000000e+00> : vector<8x128xf32>
      %62 = tpu.matmul %59, %10, %cst_22 {dimension_numbers = #tpu.dot_dimension_numbers<[1], [0], [0], [1], [0, 0, 1, 1], [], []>} : vector<8x16xf32>, vector<16x128xf32>, vector<8x128xf32> -> vector<8x128xf32>
      %63 = arith.addf %61, %62 : vector<8x128xf32>
      %64 = arith.index_cast %14 : i32 to index
      %c0_23 = arith.constant 0 : index
      %65 = vector.load %arg17[%64, %c0_23] : memref<8x128xf32, #tpu.memory_space<vmem>>, vector<8x128xf32>
      tpu.vector_store %arg17[%64, %c0_23], %63 {strides = array<i32>} : memref<8x128xf32, #tpu.memory_space<vmem>>, vector<8x128xf32>,
    } else {
    }
    %c0_i32_18 = arith.constant 0 : i32
    %47 = arith.cmpi eq, %arg0, %c0_i32_18 : i32
    %48 = arith.extui %47 : i1 to i32
    %c0_i32_19 = arith.constant 0 : i32
    %49 = arith.cmpi ne, %48, %c0_i32_19 : i32
    scf.if %49 {
      %c0_20 = arith.constant 0 : index
      %c0_21 = arith.constant 0 : index
      %50 = vector.load %arg15[%c0_20, %c0_21] : memref<8x128xf32, #tpu.memory_space<vmem>>, vector<8x128xf32>
      %c0_22 = arith.constant 0 : index
      %c0_23 = arith.constant 0 : index
      %51 = vector.load %arg16[%c0_22, %c0_23] : memref<8x128xf32, #tpu.memory_space<vmem>>, vector<8x128xf32>
      %c0_24 = arith.constant 0 : index
      %c0_25 = arith.constant 0 : index
      %52 = vector.load %arg4[%c0_24, %c0_25] : memref<8x1xf32, #tpu.memory_space<vmem>>, vector<8x1xf32>
      %53 = vector.broadcast %52 : vector<8x1xf32> to vector<8x128xf32>
      %54 = arith.mulf %51, %53 : vector<8x128xf32>
      %c0_26 = arith.constant 0 : index
      %c0_27 = arith.constant 0 : index
      %55 = vector.load %arg17[%c0_26, %c0_27] : memref<8x128xf32, #tpu.memory_space<vmem>>, vector<8x128xf32>
      %c0_28 = arith.constant 0 : index
      %c0_29 = arith.constant 0 : index
      %56 = vector.load %arg8[%c0_28, %c0_29] : memref<128x128xf32, #tpu.memory_space<vmem>>, vector<128x128xf32>
      %cst_30 = arith.constant dense<0.000000e+00> : vector<8x128xf32>
      %57 = tpu.matmul %50, %56, %cst_30 {dimension_numbers = #tpu.dot_dimension_numbers<[1], [0], [0], [1], [0, 0, 1, 1], [], []>} : vector<8x128xf32>, vector<128x128xf32>, vector<8x128xf32> -> vector<8x128xf32>
      %c0_31 = arith.constant 0 : index
      %c0_32 = arith.constant 0 : index
      %58 = vector.load %arg9[%c0_31, %c0_32] : memref<128x128xf32, #tpu.memory_space<vmem>>, vector<128x128xf32>
      %cst_33 = arith.constant dense<0.000000e+00> : vector<8x128xf32>
      %59 = tpu.matmul %54, %58, %cst_33 {dimension_numbers = #tpu.dot_dimension_numbers<[1], [0], [0], [1], [0, 0, 1, 1], [], []>} : vector<8x128xf32>, vector<128x128xf32>, vector<8x128xf32> -> vector<8x128xf32>
      %60 = arith.addf %57, %59 : vector<8x128xf32>
      %c0_34 = arith.constant 0 : index
      %c0_35 = arith.constant 0 : index
      %61 = vector.load %arg10[%c0_34, %c0_35] : memref<128x128xf32, #tpu.memory_space<vmem>>, vector<128x128xf32>
      %cst_36 = arith.constant dense<0.000000e+00> : vector<8x128xf32>
      %62 = tpu.matmul %55, %61, %cst_36 {dimension_numbers = #tpu.dot_dimension_numbers<[1], [0], [0], [1], [0, 0, 1, 1], [], []>} : vector<8x128xf32>, vector<128x128xf32>, vector<8x128xf32> -> vector<8x128xf32>
      %63 = arith.addf %60, %62 : vector<8x128xf32>
      %c0_37 = arith.constant 0 : index
      %c0_38 = arith.constant 0 : index
      %64 = vector.load %arg11[%c0_37, %c0_38] : memref<1x128xf32, #tpu.memory_space<vmem>>, vector<1x128xf32>
      %65 = vector.broadcast %64 : vector<1x128xf32> to vector<8x128xf32>
      %66 = arith.addf %63, %65 : vector<8x128xf32>
      %c0_39 = arith.constant 0 : index
      %c0_40 = arith.constant 0 : index
      %67 = vector.load %arg12[%c0_39, %c0_40] : memref<128x128xf32, #tpu.memory_space<vmem>>, vector<128x128xf32>
      %cst_41 = arith.constant dense<0.000000e+00> : vector<8x128xf32>
      %68 = tpu.matmul %66, %67, %cst_41 {dimension_numbers = #tpu.dot_dimension_numbers<[1], [0], [0], [1], [0, 0, 1, 1], [], []>} : vector<8x128xf32>, vector<128x128xf32>, vector<8x128xf32> -> vector<8x128xf32>
      %c0_42 = arith.constant 0 : index
      %c0_43 = arith.constant 0 : index
      %69 = vector.load %arg13[%c0_42, %c0_43] : memref<1x128xf32, #tpu.memory_space<vmem>>, vector<1x128xf32>
      %70 = vector.broadcast %69 : vector<1x128xf32> to vector<8x128xf32>
      %71 = arith.addf %68, %70 : vector<8x128xf32>
      %cst_44 = arith.constant dense<0xFF800000> : vector<8xf32>
      %72 = vector.multi_reduction <maximumf>, %71, %cst_44 [1] : vector<8x128xf32> to vector<8xf32>
      %73 = vector.shape_cast %72 : vector<8xf32> to vector<8x1xf32>
      %74 = vector.broadcast %73 : vector<8x1xf32> to vector<8x128xf32>
      %75 = arith.subf %71, %74 : vector<8x128xf32>
      %76 = math.exp %75 : vector<8x128xf32>
      %cst_45 = arith.constant dense<0.000000e+00> : vector<8xf32>
      %77 = vector.multi_reduction <add>, %76, %cst_45 [1] : vector<8x128xf32> to vector<8xf32>
      %78 = vector.shape_cast %77 : vector<8xf32> to vector<8x1xf32>
      %79 = math.log %78 : vector<8x1xf32>
      %80 = vector.broadcast %79 : vector<8x1xf32> to vector<8x128xf32>
      %81 = arith.subf %75, %80 : vector<8x128xf32>
      %c0_46 = arith.constant 0 : index
      %c0_47 = arith.constant 0 : index
      %82 = vector.load %arg14[%c0_46, %c0_47] : memref<8x128xf32, #tpu.memory_space<vmem>>, vector<8x128xf32>
      tpu.vector_store %arg14[%c0_46, %c0_47], %81 {strides = array<i32>} : memref<8x128xf32, #tpu.memory_space<vmem>>, vector<8x128xf32>,
    } else {
    }
    return
  }
  func.func @transform_0(%arg0: i32, %arg1: memref<2xi32, #tpu.memory_space<smem>>) -> (i32, i32) {
    %c0_i32 = arith.constant 0 : i32
    %c0_i32_0 = arith.constant 0 : i32
    return %c0_i32, %arg0 : i32, i32
  }
  func.func @transform_1(%arg0: i32, %arg1: memref<2xi32, #tpu.memory_space<smem>>) -> (i32, i32) {
    %c0_i32 = arith.constant 0 : i32
    %c0_i32_0 = arith.constant 0 : i32
    %c0_i32_1 = arith.constant 0 : i32
    return %c0_i32, %c0_i32_0 : i32, i32
  }
  func.func @transform_2(%arg0: i32, %arg1: memref<2xi32, #tpu.memory_space<smem>>) -> (i32, i32) {
    %c0_i32 = arith.constant 0 : i32
    %c0_i32_0 = arith.constant 0 : i32
    %c0_i32_1 = arith.constant 0 : i32
    return %c0_i32, %c0_i32_0 : i32, i32
  }
  func.func @transform_3(%arg0: i32, %arg1: memref<2xi32, #tpu.memory_space<smem>>) -> (i32, i32) {
    %c0_i32 = arith.constant 0 : i32
    %c0_i32_0 = arith.constant 0 : i32
    return %arg0, %c0_i32 : i32, i32
  }
  func.func @transform_4(%arg0: i32, %arg1: memref<2xi32, #tpu.memory_space<smem>>) -> (i32, i32) {
    %c0_i32 = arith.constant 0 : i32
    %c0_i32_0 = arith.constant 0 : i32
    %c0_i32_1 = arith.constant 0 : i32
    return %c0_i32, %c0_i32_0 : i32, i32
  }
  func.func @transform_5(%arg0: i32, %arg1: memref<2xi32, #tpu.memory_space<smem>>) -> (i32, i32) {
    %c0_i32 = arith.constant 0 : i32
    %c0_i32_0 = arith.constant 0 : i32
    %c0_i32_1 = arith.constant 0 : i32
    return %c0_i32, %c0_i32_0 : i32, i32
  }
  func.func @transform_6(%arg0: i32, %arg1: memref<2xi32, #tpu.memory_space<smem>>) -> (i32, i32) {
    %c0_i32 = arith.constant 0 : i32
    %c0_i32_0 = arith.constant 0 : i32
    %c0_i32_1 = arith.constant 0 : i32
    return %c0_i32, %c0_i32_0 : i32, i32
  }
  func.func @transform_7(%arg0: i32, %arg1: memref<2xi32, #tpu.memory_space<smem>>) -> (i32, i32) {
    %c0_i32 = arith.constant 0 : i32
    %c0_i32_0 = arith.constant 0 : i32
    %c0_i32_1 = arith.constant 0 : i32
    return %c0_i32, %c0_i32_0 : i32, i32
  }
  func.func @transform_8(%arg0: i32, %arg1: memref<2xi32, #tpu.memory_space<smem>>) -> (i32, i32) {
    %c0_i32 = arith.constant 0 : i32
    %c0_i32_0 = arith.constant 0 : i32
    %c0_i32_1 = arith.constant 0 : i32
    return %c0_i32, %c0_i32_0 : i32, i32
  }
  func.func @transform_9(%arg0: i32, %arg1: memref<2xi32, #tpu.memory_space<smem>>) -> (i32, i32) {
    %c0_i32 = arith.constant 0 : i32
    %c0_i32_0 = arith.constant 0 : i32
    %c0_i32_1 = arith.constant 0 : i32
    return %c0_i32, %c0_i32_0 : i32, i32
  }
  func.func @transform_10(%arg0: i32, %arg1: memref<2xi32, #tpu.memory_space<smem>>) -> (i32, i32) {
    %c0_i32 = arith.constant 0 : i32
    %c0_i32_0 = arith.constant 0 : i32
    %c0_i32_1 = arith.constant 0 : i32
    return %c0_i32, %c0_i32_0 : i32, i32
  }
  func.func @transform_11(%arg0: i32, %arg1: memref<2xi32, #tpu.memory_space<smem>>) -> (i32, i32) {
    %c0_i32 = arith.constant 0 : i32
    %c0_i32_0 = arith.constant 0 : i32
    %c0_i32_1 = arith.constant 0 : i32
    return %c0_i32, %c0_i32_0 : i32, i32
  }
  func.func @transform_12(%arg0: i32, %arg1: memref<2xi32, #tpu.memory_space<smem>>) -> (i32, i32) {
    %c0_i32 = arith.constant 0 : i32
    %c0_i32_0 = arith.constant 0 : i32
    %c0_i32_1 = arith.constant 0 : i32
    return %c0_i32, %c0_i32_0 : i32, i32
  }
}

</mosaic_0001>

<bundles_post_ra>
// kernel: tpu_custom_call.1
= control target key start
LH: loop header
LB: loop body
LE: loop exit
PB: predicated region body
PF: predicated region fallthrough
CT: control target
= control target key end

     0   :  { %s1745_s0 = inlined_call_operand.vmem [shape: s32[2], index: 0, kind: input, shape index: {}]   ;;  %s1746_s1 = inlined_call_operand.vmem [shape: s32[1,16], index: 1, kind: input, shape index: {}]   ;;  %s1747_s2 = inlined_call_operand.vmem [shape: s32[8,1], index: 2, kind: input, shape index: {}]   ;;  %s1748_s3 = inlined_call_operand.vmem [shape: f32[8,1], index: 3, kind: input, shape index: {}]   ;;  %s1749_s4 = inlined_call_operand.vmem [shape: f32[16,128], index: 4, kind: input, shape index: {}]   ;;  %s1750_s5 = inlined_call_operand.hbm [shape: f32[128,128], index: 5, kind: input, shape index: {}]   ;;  %s1751_s6 = inlined_call_operand.vmem [shape: f32[1,128], index: 6, kind: input, shape index: {}]   ;;  %s1752_s7 = inlined_call_operand.hbm [shape: f32[128,128], index: 7, kind: input, shape index: {}]   ;;  %s1753_s8 = inlined_call_operand.hbm [shape: f32[128,128], index: 8, kind: input, shape index: {}]   ;;  %s1754_s9 = inlined_call_operand.hbm [shape: f32[128,128], index: 9, kind: input, shape index: {}]   ;;  %s1755_s10 = inlined_call_operand.vmem [shape: f32[1,128], index: 10, kind: input, shape index: {}]   ;;  %s1756_s11 = inlined_call_operand.hbm [shape: f32[128,128], index: 11, kind: input, shape index: {}]   ;;  %s1757_s12 = inlined_call_operand.vmem [shape: f32[1,128], index: 12, kind: input, shape index: {}]   ;;  %s1758_s13 = inlined_call_operand.hbm [shape: f32[8,128], index: 13, kind: output, shape index: {}]  }
   0x1   :  { %s18_s27 = sshll.u32 %s1745_s0, 4  ;;  %s19_s27 = int_to_ptr.vmem [resolvable:$true] %s18_s27 }
   0x2   :  { %s1318_s28 = scalar_lea.vmem %s19_s27, 16  ;;  %p1323_p1 = scmp.lt.s32.totalorder %s19_s27, %s19_s27 }
   0x3   :  { %p1319_p0 = scmp.ne.s32.totalorder %s19_s27, %s1318_s28  ;;  %p1324_p2 = scmp.lt.s32.totalorder %s1318_s28, %s1318_s28 }
   0x5   :  { %p1325_p3 = por %p1324_p2, %p1323_p1 }
   0x7   :  { %p1326_p4 = pnand %p1325_p3, %p1319_p0 }
   0x9   :  { %1329 = shalt.err (!%p1326_p4)  }
   0xa   :  { %s1460_s29 = smov [#allocation6]  }
   0xb   :  { %21 = dma.vmem_to_smem %s19_s27, 16, %s1460_s29, [#allocation5] }
   0xc   :  { %1450 = dma.done.wait [#allocation5], 16 }
   0xd   :  { %1451 = vsyncadd [#allocation5], 4294967280 }
   0xe   :  { %23 = sfence }
   0xf   :  { %24 = vsyncpa [#allocation8], 0 }
  0x10   :  { %25 = vsyncpa [#allocation11], 0 }
  0x11   :  { %26 = vsyncpa [#allocation14], 0 }
  0x12   :  { %27 = vsyncpa [#allocation9], 0  ;;  %s1461_s30 = smov [#allocation10]   ;;  %s1462_s0 = smov [#allocation13]  }
  0x13   :  { %s55_s14 = sshll.u32 %s1461_s30, 4  ;;  %s79_s15 = sshll.u32 %s1462_s0, 4  ;;  %s56_s14 = int_to_ptr.vmem [resolvable:$true] %s55_s14  ;;  %s80_s15 = int_to_ptr.vmem [resolvable:$true] %s79_s15 }
  0x14   :  { %s1338_s16 = scalar_lea.vmem %s56_s14, 2048  ;;  %p1343_p6 = scmp.lt.s32.totalorder %s56_s14, %s56_s14 }
  0x15   :  { %p1339_p5 = scmp.ne.s32.totalorder %s56_s14, %s1338_s16  ;;  %p1344_p7 = scmp.lt.s32.totalorder %s1338_s16, %s1338_s16 }
  0x17   :  { %p1345_p8 = por %p1344_p7, %p1343_p6 }
  0x19   :  { %p1346_p9 = pnand %p1345_p8, %p1339_p5 }
  0x1b   :  { %1349 = shalt.err (!%p1346_p9)
}
  0x1c   :  { %s1463_s17 = smov 128   ;;  %s1464_s18 = smov 8  }
  0x1d   :  { %61 = dma.hbm_to_vmem [thread:$0]  %s1752_s7, 2048, %s56_s14, [#allocation11], %s1463_s17, %s1463_s17, %s1464_s18  }
  0x1e   :  { %s1358_s21 = scalar_lea.vmem %s80_s15, 2048  ;;  %p1363_p11 = scmp.lt.s32.totalorder %s80_s15, %s80_s15 }
  0x1f   :  { %p1359_p10 = scmp.ne.s32.totalorder %s80_s15, %s1358_s21  ;;  %p1364_p12 = scmp.lt.s32.totalorder %s1358_s21, %s1358_s21 }
  0x21   :  { %p1365_p13 = por %p1364_p12, %p1363_p11 }
  0x23   :  { %p1366_p0 = pnand %p1365_p13, %p1359_p10 }
  0x25   :  { %1369 = shalt.err (!%p1366_p0)
}
  0x26   :  { %85 = dma.hbm_to_vmem [thread:$0]  %s1754_s9, 2048, %s80_s15, [#allocation14], %s1463_s17, %s1463_s17, %s1464_s18  }
  0x27   :  { %s1465_s24 = smov [#allocation7]   ;;  %s1466_s26 = smov [#allocation12]  }
  0x28   :  { %s41_s25 = sshll.u32 %s1465_s24, 4  ;;  %s67_s27 = sshll.u32 %s1466_s26, 4  ;;  %s42_s25 = int_to_ptr.vmem [resolvable:$true] %s41_s25  ;;  %s68_s27 = int_to_ptr.vmem [resolvable:$true] %s67_s27 }
  0x29   :  { %s1378_s7 = scalar_lea.vmem %s42_s25, 2048  ;;  %p1383_p2 = scmp.lt.s32.totalorder %s42_s25, %s42_s25 }
  0x2a   :  { %p1379_p1 = scmp.ne.s32.totalorder %s42_s25, %s1378_s7  ;;  %p1384_p3 = scmp.lt.s32.totalorder %s1378_s7, %s1378_s7 }
  0x2c   :  { %p1385_p4 = por %p1384_p3, %p1383_p2 }
  0x2e   :  { %p1386_p5 = pnand %p1385_p4, %p1379_p1 }
  0x30   :  { %1389 = shalt.err (!%p1386_p5)
}
  0x31   :  { %47 = dma.hbm_to_vmem [thread:$0]  %s1750_s5, 2048, %s42_s25, [#allocation8], %s1463_s17, %s1463_s17, %s1464_s18  }
  0x32   :  { %s1398_s9 = scalar_lea.vmem %s68_s27, 2048  ;;  %p1403_p7 = scmp.lt.s32.totalorder %s68_s27, %s68_s27 }
  0x33   :  { %p1399_p6 = scmp.ne.s32.totalorder %s68_s27, %s1398_s9  ;;  %p1404_p8 = scmp.lt.s32.totalorder %s1398_s9, %s1398_s9 }
  0x35   :  { %p1405_p9 = por %p1404_p8, %p1403_p7 }
  0x37   :  { %p1406_p10 = pnand %p1405_p9, %p1399_p6 }
  0x39   :  { %1409 = shalt.err (!%p1406_p10)
}
  0x3a   :  { %73 = dma.hbm_to_vmem [thread:$0]  %s1753_s8, 2048, %s68_s27, [#allocation11], %s1463_s17, %s1463_s17, %s1464_s18  }
  0x3b   :  { %s1467_s0 = smov [#allocation15]  }
  0x3c   :  { %s93_s15 = sshll.u32 %s1467_s0, 4  ;;  %s94_s15 = int_to_ptr.vmem [resolvable:$true] %s93_s15 }
  0x3d   :  { %s1418_s16 = scalar_lea.vmem %s94_s15, 2048  ;;  %p1423_p12 = scmp.lt.s32.totalorder %s94_s15, %s94_s15 }
  0x3e   :  { %p1419_p11 = scmp.ne.s32.totalorder %s94_s15, %s1418_s16  ;;  %p1424_p13 = scmp.lt.s32.totalorder %s1418_s16, %s1418_s16 }
  0x40   :  { %p1425_p0 = por %p1424_p13, %p1423_p12 }
  0x42   :  { %p1426_p1 = pnand %p1425_p0, %p1419_p11 }
  0x44   :  { %1429 = shalt.err (!%p1426_p1)
}
  0x45   :  { %99 = dma.hbm_to_vmem [thread:$0]  %s1756_s11, 2048, %s94_s15, [#allocation14], %s1463_s17, %s1463_s17, %s1464_s18  }
  0x46   :  { %1452 = dma.done.wait [#allocation8], 2048  }
  0x47   :  { %1453 = vsyncadd [#allocation8], 4294965248 }
  0x48   :  { %1454 = dma.done.wait [#allocation11], 4096  }
  0x49   :  { %1455 = vsyncadd [#allocation11], 4294963200 }
  0x4a   :  { %1456 = dma.done.wait [#allocation14], 4096  }
  0x4b   :  { %1457 = vsyncadd [#allocation14], 4294963200  ;;  %s1578_s8 = sld [smem:[#allocation6 + $0x1]]  ;;  %v1468_v0 = vmov 0.0   ;;  %v231_v1 = vlaneseq  ;;  %v141_v3 = vld [vmem:[#allocation7 + $0x78] sm:$0xff]  ;;  %v140_v4 = vld [vmem:[#allocation7 + $0x70] sm:$0xff] }
  0x4c   :  { %123 = vst [vmem:[#allocation4] sm:$0xff] %v1468_v0  ;;  %121 = vst [vmem:[#allocation2] sm:$0xff] %v1468_v0  ;;  %1143 = vmatprep.subr.mxu1 %v1468_v0  ;;  %s1584_s20 = sld [smem:[#allocation6]]  ;;  %1108 = vmatprep.subr.mxu0 %v141_v3  ;;  %v139_v6 = vld [vmem:[#allocation7 + $0x68] sm:$0xff]  ;;  %v138_v8 = vld [vmem:[#allocation7 + $0x60] sm:$0xff]  ;;  %vm1469_vm1 = vmmov 0  }
  0x4d   :  { %122 = vst [vmem:[#allocation3] sm:$0xff] %v1468_v0  ;;  %v1587_v2 = vshrl.u32 %v231_v1, 7  ;;  %1109 = vmatpush3.msra.mxu0 %v141_v3  ;;  %v124_v9 = vld [vmem:[%s1749_s4] sm:$0xff]  ;;  %v137_v12 = vld [vmem:[#allocation7 + $0x58] sm:$0xff]  ;;  %v136_v14 = vld [vmem:[#allocation7 + $0x50] sm:$0xff]  ;;  %1147 = vmatprep.mubr.msk.f32.mxu1 %vm1469_vm1, %v1468_v0  ;;  %vm431_vm2 = vcmask 130048  }
  0x4e   :  { %1110 = vmatprep.subr.mxu0 %v140_v4  ;;  %1140 = vmatprep.mubr.f32.mxu0 %v124_v9  ;;  %v1008_v13 = vld [vmem:[%s1746_s1] ss:$0 sm:$0xff]  ;;  %v134_v20 = vld [vmem:[#allocation7 + $0x40] sm:$0xff]  ;;  %v133_v21 = vld [vmem:[#allocation7 + $0x38] sm:$0xff]  ;;  %vm412_vm3 = vcmask 1041409   ;;  %vm414_vm4 = vcmask 1042434  }
  0x4f   :  { %1111 = vmatpush3.msra.mxu0 %v140_v4  ;;  %v255_v10 = vsub.s32 1, %v1587_v2  ;;  %v244_v11 = vsub.s32 0, %v1587_v2  ;;  %v135_v18 = vld [vmem:[#allocation7 + $0x48] sm:$0xff]  ;;  %v266_v19 = vsub.s32 2, %v1587_v2  ;;  %v277_v23 = vsub.s32 3, %v1587_v2  ;;  %v132_v24 = vld [vmem:[#allocation7 + $0x30] sm:$0xff] }
  0x50   :  { %1112 = vmatprep.subr.mxu0 %v139_v6  ;;  %v131_v25 = vld [vmem:[#allocation7 + $0x28] sm:$0xff]  ;;  %v288_v27 = vsub.s32 4, %v1587_v2  ;;  %v130_v28 = vld [vmem:[#allocation7 + $0x20] sm:$0xff]  ;;  %v129_v29 = vld [vmem:[#allocation7 + $0x18] sm:$0xff]  ;;  %v299_v31 = vsub.s32 5, %v1587_v2  ;;  %v310_v35 = vsub.s32 6, %v1587_v2 }
  0x51   :  { %1113 = vmatpush3.msra.mxu0 %v139_v6  ;;  %v128_v32 = vld [vmem:[#allocation7 + $0x10] sm:$0xff]  ;;  %v127_v33 = vld [vmem:[#allocation7 + $0x8] sm:$0xff]  ;;  %v126_v36 = vld [vmem:[#allocation7] sm:$0xff]  ;;  %v321_v39 = vsub.s32 7, %v1587_v2  ;;  %vm416_vm5 = vcmask 1043459   ;;  %vm418_vm6 = vcmask 1044484  }
  0x52   :  { %v233_v5 = vstv %s1584_s20  ;;  %1114 = vmatprep.subr.mxu0 %v138_v8  ;;  %v125_v37 = vld [vmem:[%s1749_s4 + $0x8] sm:$0xff]  ;;  %v1006_v54 = vld [vmem:[%s1751_s6] ss:$0 sm:$0xff]  ;;  %vm420_vm7 = vcmask 1045509   ;;  %vm422_vm8 = vcmask 1046534   ;;  %vm424_vm9 = vcmask 1047559  }
  0x53   :  { %v234_v7 = vadd.s32 %v233_v5, %v1587_v2  ;;  %1115 = vmatpush3.msra.mxu0 %v138_v8  ;;  %s402_s6 = scalar_lea.vmem [#allocation2], %s1584_s20  ;;  %s429_s24 = scalar_lea.vmem [#allocation3], %s1584_s20 }
  0x54   :  { %1116 = vmatprep.subr.mxu0 %v137_v12  ;;  %p1011_p2 = scmp.le.s32.totalorder %s1578_s8, 0 }
  0x55   :  { %vm239_vm0 = vcmp.eq.s32.totalorder %v1008_v13, %v234_v7  ;;  %1117 = vmatpush3.msra.mxu0 %v137_v12  ;;  %s516_s27 = scalar_lea.vmem (!%p1011_p2), %s1747_s2, %s1584_s20  ;;  %s524_s2 = scalar_lea.vmem (!%p1011_p2), [#allocation4], %s1584_s20 }
  0x56   :  { %v1600_v15 = vsel %vm239_vm0, 1.0, %v1468_v0  ;;  %1118 = vmatprep.subr.mxu0 %v136_v14 }
  0x57   :  { %v256_v16 = vrot.slane %v1600_v15, %v255_v10  ;;  %v245_v17 = vrot.slane %v1600_v15, %v244_v11  ;;  %1119 = vmatpush3.msra.mxu0 %v136_v14  ;;  %v267_v22 = vrot.slane %v1600_v15, %v266_v19  ;;  %v278_v26 = vrot.slane %v1600_v15, %v277_v23 }
  0x58   :  { %1120 = vmatprep.subr.mxu0 %v135_v18  ;;  %v289_v30 = vrot.slane %v1600_v15, %v288_v27  ;;  %v300_v34 = vrot.slane %v1600_v15, %v299_v31  ;;  %v311_v38 = vrot.slane %v1600_v15, %v310_v35  ;;  %v322_v40 = vrot.slane %v1600_v15, %v321_v39 }
  0x59   :  { %258 = vbcast.lane.b32.xlu1 %v256_v16, 256  ;;  %247 = vbcast.lane.b32.xlu0 %v245_v17, 256 }
  0x5a   :  { %1121 = vmatpush3.msra.mxu0 %v135_v18 }
  0x5b   :  { %1122 = vmatprep.subr.mxu0 %v134_v20 }
  0x5c   :  { %1123 = vmatpush3.msra.mxu0 %v134_v20 }
  0x5d   :  { %262 = vbcast.lane.b32.xlu1 %v256_v16, 264  ;;  %251 = vbcast.lane.b32.xlu0 %v245_v17, 264 }
  0x5e   :  { %1124 = vmatprep.subr.mxu0 %v133_v21 }
  0x5f   :  { %1125 = vmatpush3.msra.mxu0 %v133_v21 }
  0x60   :  { %1126 = vmatprep.subr.mxu0 %v132_v24 }
  0x61   :  { %273 = vbcast.lane.b32.xlu1 %v267_v22, 264  ;;  %1127 = vmatpush3.msra.mxu0 %v132_v24 }
  0x62   :  { %269 = vbcast.lane.b32.xlu0 %v267_v22, 256  ;;  %1128 = vmatprep.subr.mxu0 %v131_v25 }
  0x63   :  { %1129 = vmatpush3.msra.mxu0 %v131_v25 }
  0x64   :  { %1130 = vmatprep.subr.mxu0 %v130_v28 }
  0x65   :  { %284 = vbcast.lane.b32.xlu1 %v278_v26, 264  ;;  %1131 = vmatpush3.msra.mxu0 %v130_v28 }
  0x66   :  { %280 = vbcast.lane.b32.xlu0 %v278_v26, 256  ;;  %1132 = vmatprep.subr.mxu0 %v129_v29 }
  0x67   :  { %1133 = vmatpush3.msra.mxu0 %v129_v29 }
  0x68   :  { %1134 = vmatprep.subr.mxu0 %v128_v32 }
  0x69   :  { %295 = vbcast.lane.b32.xlu1 %v289_v30, 264  ;;  %1135 = vmatpush3.msra.mxu0 %v128_v32 }
  0x6a   :  { %291 = vbcast.lane.b32.xlu0 %v289_v30, 256  ;;  %1136 = vmatprep.subr.mxu0 %v127_v33 }
  0x6b   :  { %1137 = vmatpush3.msra.mxu0 %v127_v33 }
  0x6c   :  { %1138 = vmatprep.subr.mxu0 %v126_v36 }
  0x6d   :  { %306 = vbcast.lane.b32.xlu1 %v300_v34, 264  ;;  %1139 = vmatpush3.msra.mxu0 %v126_v36 }
  0x6e   :  { %302 = vbcast.lane.b32.xlu0 %v300_v34, 256  ;;  %1141 = vmatmul.mubr.f32.vlgmr.msra.gmra.mxu0 %v125_v37 }
  0x71   :  { %317 = vbcast.lane.b32.xlu1 %v311_v38, 264 }
  0x72   :  { %313 = vbcast.lane.b32.xlu0 %v311_v38, 256 }
  0x75   :  { %328 = vbcast.lane.b32.xlu1 %v322_v40, 264 }
  0x76   :  { %324 = vbcast.lane.b32.xlu0 %v322_v40, 256 }
  0xcb   :  { %v259_v41 = vpop.permute.xlu1 %258  ;;  %v248_v42 = vpop.permute.xlu0 %247 }
  0xcf   :  { %v263_v43 = vpop.permute.xlu1 %262  ;;  %v252_v44 = vpop.permute.xlu0 %251 }
  0xd3   :  { %v274_v45 = vpop.permute.xlu1 %273 }
  0xd4   :  { %v270_v46 = vpop.permute.xlu0 %269 }
  0xd7   :  { %v285_v47 = vpop.permute.xlu1 %284 }
  0xd8   :  { %v281_v48 = vpop.permute.xlu0 %280 }
  0xdb   :  { %v296_v49 = vpop.permute.xlu1 %295 }
  0xdc   :  { %v292_v50 = vpop.permute.xlu0 %291 }
  0xdf   :  { %v307_v51 = vpop.permute.xlu1 %306 }
  0xe0   :  { %v303_v52 = vpop.permute.xlu0 %302 }
  0xe3   :  { %v318_v53 = vpop.permute.xlu1 %317 }
  0xe4   :  { %v314_v56 = vpop.permute.xlu0 %313 }
  0xe7   :  { %v329_v59 = vpop.permute.xlu1 %328 }
  0xe8   :  { %v325_v4 = vpop.permute.xlu0 %324 }
 0x12e   :  { %v1142_v55 = vpop.f32.mrf.mxu0 }
 0x12f   :  { %v221_v57 = vadd.f32 %v1142_v55, %v1006_v54 }
 0x130   :  { %v215_v58 = vpop.f32.mrf.mxu0 }
 0x131   :  { %v1624_v60 = vmax.f32 %v221_v57, 0.0  ;;  %v216_v61 = vadd.f32 %v1006_v54, %v215_v58 }
 0x133   :  { %v1626_v62 = vmax.f32 %v216_v61, 0.0  ;;  %v345_v63 = vmul.f32 %v329_v59, %v1624_v60  ;;  %1144 = vmatpush3.msra.mxu1 %v1624_v60  ;;  %v331_v2 = vmul.f32 %v252_v44, %v1624_v60  ;;  %v333_v3 = vmul.f32 %v263_v43, %v1624_v60 }
 0x134   :  { %v335_v5 = vmul.f32 %v274_v45, %v1624_v60  ;;  %v337_v6 = vmul.f32 %v285_v47, %v1624_v60  ;;  %v339_v7 = vmul.f32 %v296_v49, %v1624_v60  ;;  %v341_v8 = vmul.f32 %v307_v51, %v1624_v60  ;;  %1145 = vmatprep.subr.mxu1 %v1468_v0 }
 0x135   :  { %v330_v9 = vmul.f32 %v248_v42, %v1626_v62  ;;  %v332_v10 = vmul.f32 %v259_v41, %v1626_v62  ;;  %v334_v11 = vmul.f32 %v270_v46, %v1626_v62  ;;  %v336_v12 = vmul.f32 %v281_v48, %v1626_v62  ;;  %1146 = vmatpush3.msra.mxu1 %v1626_v62 }
 0x136   :  { %v338_v13 = vmul.f32 %v292_v50, %v1626_v62  ;;  %v340_v14 = vmul.f32 %v303_v52, %v1626_v62  ;;  %v342_v16 = vmul.f32 %v314_v56, %v1626_v62  ;;  %v343_v17 = vmul.f32 %v318_v53, %v1624_v60  ;;  %1148 = vmatmul.mubr.msk.f32.vlgmr.msra.gmra.mxu1 %vm431_vm2, %v1600_v15 }
 0x137   :  { %v344_v18 = vmul.f32 %v325_v4, %v1626_v62  ;;  %v346_v19 = vmax.f32 %v330_v9, %v331_v2  ;;  %v353_v20 = vmax.f32 %v332_v10, %v333_v3  ;;  %v360_v21 = vmax.f32 %v334_v11, %v335_v5 }
 0x138   :  { %v367_v22 = vmax.f32 %v336_v12, %v337_v6  ;;  %v374_v23 = vmax.f32 %v338_v13, %v339_v7  ;;  %v381_v24 = vmax.f32 %v340_v14, %v341_v8  ;;  %v388_v25 = vmax.f32 %v342_v16, %v343_v17 }
 0x139   :  { %v347_v26 = vrot.slane %v346_v19, 4  ;;  %v354_v27 = vrot.slane %v353_v20, 4  ;;  %v361_v28 = vrot.slane %v360_v21, 4  ;;  %v395_v29 = vmax.f32 %v344_v18, %v345_v63 }
 0x13a   :  { %v368_v30 = vrot.slane %v367_v22, 4  ;;  %v375_v31 = vrot.slane %v374_v23, 4  ;;  %v382_v32 = vrot.slane %v381_v24, 4  ;;  %v389_v33 = vrot.slane %v388_v25, 4 }
 0x13b   :  { %v348_v34 = vmax.f32 %v346_v19, %v347_v26  ;;  %v355_v35 = vmax.f32 %v353_v20, %v354_v27  ;;  %v362_v15 = vmax.f32 %v360_v21, %v361_v28  ;;  %v396_v36 = vrot.slane %v395_v29, 4  ;;  %v403_v19 = vld [vmem:[%s402_s6] sm:$0xff] }
 0x13c   :  { %v369_v37 = vmax.f32 %v367_v22, %v368_v30  ;;  %v376_v38 = vmax.f32 %v374_v23, %v375_v31  ;;  %v383_v39 = vmax.f32 %v381_v24, %v382_v32  ;;  %v390_v40 = vmax.f32 %v388_v25, %v389_v33  ;;  %v430_v24 = vld [vmem:[%s429_s24] sm:$0xff] }
 0x13d   :  { %v349_v41 = vrot.slane %v348_v34, 2  ;;  %v356_v42 = vrot.slane %v355_v35, 2  ;;  %v363_v43 = vrot.slane %v362_v15, 2  ;;  %v397_v44 = vmax.f32 %v395_v29, %v396_v36 }
 0x13e   :  { %v370_v45 = vrot.slane %v369_v37, 2  ;;  %v377_v46 = vrot.slane %v376_v38, 2  ;;  %v384_v47 = vrot.slane %v383_v39, 2  ;;  %v391_v48 = vrot.slane %v390_v40, 2 }
 0x13f   :  { %v350_v49 = vmax.f32 %v348_v34, %v349_v41  ;;  %v357_v50 = vmax.f32 %v355_v35, %v356_v42  ;;  %v364_v51 = vmax.f32 %v362_v15, %v363_v43  ;;  %v398_v52 = vrot.slane %v397_v44, 2 }
 0x140   :  { %v371_v53 = vmax.f32 %v369_v37, %v370_v45  ;;  %v378_v54 = vmax.f32 %v376_v38, %v377_v46  ;;  %v385_v55 = vmax.f32 %v383_v39, %v384_v47  ;;  %v392_v56 = vmax.f32 %v390_v40, %v391_v48 }
 0x141   :  { %v351_v57 = vrot.slane %v350_v49, 1  ;;  %v358_v58 = vrot.slane %v357_v50, 1  ;;  %v365_v59 = vrot.slane %v364_v51, 1  ;;  %v399_v61 = vmax.f32 %v397_v44, %v398_v52 }
 0x142   :  { %v372_v63 = vrot.slane %v371_v53, 1  ;;  %v379_v2 = vrot.slane %v378_v54, 1  ;;  %v386_v6 = vrot.slane %v385_v55, 1  ;;  %v393_v7 = vrot.slane %v392_v56, 1 }
 0x143   :  { %v352_v3 = vmax.f32 %v350_v49, %v351_v57  ;;  %v359_v4 = vmax.f32 %v357_v50, %v358_v58  ;;  %v366_v5 = vmax.f32 %v364_v51, %v365_v59  ;;  %v400_v9 = vrot.slane %v399_v61, 1 }
 0x144   :  { %v373_v8 = vmax.f32 %v371_v53, %v372_v63  ;;  %v380_v11 = vmax.f32 %v378_v54, %v379_v2  ;;  %v387_v13 = vmax.f32 %v385_v55, %v386_v6  ;;  %v394_v16 = vmax.f32 %v392_v56, %v393_v7 }
 0x145   :  { %v413_v10 = vsel %vm412_vm3, %v359_v4, %v352_v3  ;;  %v401_v18 = vmax.f32 %v399_v61, %v400_v9 }
 0x146   :  { %v415_v12 = vsel %vm414_vm4, %v366_v5, %v413_v10 }
 0x147   :  { %v417_v14 = vsel %vm416_vm5, %v373_v8, %v415_v12 }
 0x148   :  { %v419_v17 = vsel %vm418_vm6, %v380_v11, %v417_v14 }
 0x149   :  { %v421_v20 = vsel %vm420_vm7, %v387_v13, %v419_v17 }
 0x14a   :  { %v423_v21 = vsel %vm422_vm8, %v394_v16, %v421_v20 }
 0x14b   :  { %v425_v22 = vsel %vm424_vm9, %v401_v18, %v423_v21 }
 0x14c   :  { %v427_v23 = vmax.f32 %v403_v19, %v425_v22 }
 0x14e   :  { %428 = vst [vmem:[%s402_s6] sm:$0xff] %v427_v23 }
 0x1f5   :  { %510 = sbr.rel (%p1011_p2) target bundleno = 830 (0x33e), region = 77 }
 0x1f6   :  { %v501_v25 = vpop.f32.mrf.mxu1 }
 0x1f7   :  { %v505_v26 = vadd.f32 %v501_v25, %v430_v24 }
 0x1f8   :  { %v1149_v27 = vpop.f32.mrf.mxu1 }
 0x1f9   :  { %506 = vst [vmem:[%s429_s24] sm:$0xff] %v505_v26 }
 0x1fa   :  { %v1470_v28 = vmov 0   ;;  %v517_v29 = vld [vmem:[%s516_s27] sm:$0xff]  ;;  %v1471_v30 = vmov 0.0   ;;  %vm1472_vm10 = vmmov 0   ;;  %v513_v31 = vand.u32 127, %v231_v1 }
 0x1fb   :  { %1312 = vset.pattern.permute.xlu0 %v1470_v28  ;;  %1150 = vmatprep.subr.mxu0 %v1471_v30  ;;  %v525_v34 = vld [vmem:[%s524_s2] sm:$0xff] }
 0x1fc   :  { %519 = vperm.xlu0 %1312, %v517_v29   ;;  %1151 = vmatpush3.msra.mxu0 %v1624_v60 }
 0x1fd   :  { %1152 = vmatprep.subr.mxu0 %v1471_v30  ;;  %1154 = vmatprep.mubr.msk.f32.mxu0 %vm1472_vm10, %v1471_v30 }
 0x1fe   :  { %1153 = vmatpush3.msra.mxu0 %v1626_v62 }
 0x277   :  { %v520_v32 = vpop.permute.xlu0 %519 }
 0x278   :  { %vm521_vm11 = vcmp.eq.s32.totalorder %v513_v31, %v520_v32 }
 0x279   :  { %v1012_v33 = vsel %vm521_vm11, 1.0, %v1471_v30 }
 0x27a   :  { %1155 = vmatmul.mubr.msk.f32.vlgmr.msra.gmra.mxu0 %vm431_vm2, %v1012_v33 }
 0x33a   :  { %v595_v35 = vpop.f32.mrf.mxu0 }
 0x33b   :  { %v599_v15 = vadd.f32 %v595_v35, %v525_v34 }
 0x33c   :  { %v1156_v36 = vpop.f32.mrf.mxu0 }
 0x33d   :  { %600 = vst [vmem:[%s524_s2] sm:$0xff] %v599_v15 }
 0x33e PF:  { %v606_v60 = vld [vmem:[%s1748_s3] sm:$0xff]  ;;  %1157 = vmatprep.subr.mxu0 %v1468_v0  ;;  %v645_v62 = vld [vmem:[#allocation12 + $0x78] sm:$0xff]  ;;  %1192 = vmatprep.subr.mxu1 %v1468_v0  ;;  %v1473_v37 = vmov 0   ;;  %v644_v38 = vld [vmem:[#allocation12 + $0x70] sm:$0xff] }
 0x33f   :  { %v629_v1 = vld [vmem:[#allocation10 + $0x78] sm:$0xff]  ;;  %1313 = vset.pattern.permute.xlu0 %v1473_v37  ;;  %1158 = vmatpush3.msra.mxu0 %v645_v62  ;;  %v628_v39 = vld [vmem:[#allocation10 + $0x70] sm:$0xff]  ;;  %v643_v40 = vld [vmem:[#allocation12 + $0x68] sm:$0xff] }
 0x340   :  { %609 = vperm.xlu0 %1313, %v606_v60   ;;  %1159 = vmatprep.subr.mxu0 %v1468_v0  ;;  %v627_v41 = vld [vmem:[#allocation10 + $0x68] sm:$0xff]  ;;  %v642_v42 = vld [vmem:[#allocation12 + $0x60] sm:$0xff]  ;;  %v641_v44 = vld [vmem:[#allocation12 + $0x58] sm:$0xff] }
 0x341   :  { %1193 = vmatpush3.msra.mxu1 %v629_v1  ;;  %1160 = vmatpush3.msra.mxu0 %v644_v38  ;;  %v626_v43 = vld [vmem:[#allocation10 + $0x60] sm:$0xff]  ;;  %v625_v45 = vld [vmem:[#allocation10 + $0x58] sm:$0xff]  ;;  %v640_v46 = vld [vmem:[#allocation12 + $0x50] sm:$0xff] }
 0x342   :  { %1194 = vmatprep.subr.mxu1 %v1468_v0  ;;  %1161 = vmatprep.subr.mxu0 %v1468_v0  ;;  %v624_v47 = vld [vmem:[#allocation10 + $0x50] sm:$0xff]  ;;  %v639_v48 = vld [vmem:[#allocation12 + $0x48] sm:$0xff]  ;;  %v638_v50 = vld [vmem:[#allocation12 + $0x40] sm:$0xff] }
 0x343   :  { %1195 = vmatpush3.msra.mxu1 %v628_v39  ;;  %1162 = vmatpush3.msra.mxu0 %v643_v40  ;;  %v623_v49 = vld [vmem:[#allocation10 + $0x48] sm:$0xff]  ;;  %v622_v51 = vld [vmem:[#allocation10 + $0x40] sm:$0xff]  ;;  %v637_v52 = vld [vmem:[#allocation12 + $0x38] sm:$0xff] }
 0x344   :  { %1196 = vmatprep.subr.mxu1 %v1468_v0  ;;  %1163 = vmatprep.subr.mxu0 %v1468_v0  ;;  %v621_v53 = vld [vmem:[#allocation10 + $0x38] sm:$0xff]  ;;  %v636_v54 = vld [vmem:[#allocation12 + $0x30] sm:$0xff]  ;;  %v635_v56 = vld [vmem:[#allocation12 + $0x28] sm:$0xff] }
 0x345   :  { %1197 = vmatpush3.msra.mxu1 %v627_v41  ;;  %1164 = vmatpush3.msra.mxu0 %v642_v42  ;;  %v620_v55 = vld [vmem:[#allocation10 + $0x30] sm:$0xff]  ;;  %v619_v57 = vld [vmem:[#allocation10 + $0x28] sm:$0xff]  ;;  %v634_v58 = vld [vmem:[#allocation12 + $0x20] sm:$0xff] }
 0x346   :  { %1198 = vmatprep.subr.mxu1 %v1468_v0  ;;  %1165 = vmatprep.subr.mxu0 %v1468_v0  ;;  %v618_v59 = vld [vmem:[#allocation10 + $0x20] sm:$0xff]  ;;  %v633_v61 = vld [vmem:[#allocation12 + $0x18] sm:$0xff]  ;;  %v632_v2 = vld [vmem:[#allocation12 + $0x10] sm:$0xff] }
 0x347   :  { %1199 = vmatpush3.msra.mxu1 %v626_v43  ;;  %1166 = vmatpush3.msra.mxu0 %v641_v44  ;;  %v617_v63 = vld [vmem:[#allocation10 + $0x18] sm:$0xff]  ;;  %v616_v3 = vld [vmem:[#allocation10 + $0x10] sm:$0xff]  ;;  %v631_v4 = vld [vmem:[#allocation12 + $0x8] sm:$0xff] }
 0x348   :  { %1200 = vmatprep.subr.mxu1 %v1468_v0  ;;  %1167 = vmatprep.subr.mxu0 %v1468_v0  ;;  %v615_v5 = vld [vmem:[#allocation10 + $0x8] sm:$0xff]  ;;  %v630_v6 = vld [vmem:[#allocation12] sm:$0xff]  ;;  %v605_v9 = vld [vmem:[#allocation3] sm:$0xff] }
 0x349   :  { %1201 = vmatpush3.msra.mxu1 %v625_v45  ;;  %1168 = vmatpush3.msra.mxu0 %v640_v46  ;;  %v614_v7 = vld [vmem:[#allocation10] sm:$0xff]  ;;  %v604_v8 = vld [vmem:[#allocation2] sm:$0xff]  ;;  %v801_v12 = vld [vmem:[#allocation13 + $0x78] sm:$0xff] }
 0x34a   :  { %1202 = vmatprep.subr.mxu1 %v1468_v0  ;;  %1169 = vmatprep.subr.mxu0 %v1468_v0  ;;  %v800_v13 = vld [vmem:[#allocation13 + $0x70] sm:$0xff]  ;;  %v799_v14 = vld [vmem:[#allocation13 + $0x68] sm:$0xff]  ;;  %v798_v16 = vld [vmem:[#allocation13 + $0x60] sm:$0xff] }
 0x34b   :  { %1203 = vmatpush3.msra.mxu1 %v624_v47  ;;  %1170 = vmatpush3.msra.mxu0 %v639_v48  ;;  %v797_v17 = vld [vmem:[#allocation13 + $0x58] sm:$0xff]  ;;  %v796_v18 = vld [vmem:[#allocation13 + $0x50] sm:$0xff]  ;;  %v795_v19 = vld [vmem:[#allocation13 + $0x48] sm:$0xff] }
 0x34c   :  { %1204 = vmatprep.subr.mxu1 %v1468_v0  ;;  %1171 = vmatprep.subr.mxu0 %v1468_v0  ;;  %v794_v20 = vld [vmem:[#allocation13 + $0x40] sm:$0xff]  ;;  %v793_v21 = vld [vmem:[#allocation13 + $0x38] sm:$0xff]  ;;  %v792_v22 = vld [vmem:[#allocation13 + $0x30] sm:$0xff] }
 0x34d   :  { %1205 = vmatpush3.msra.mxu1 %v623_v49  ;;  %1172 = vmatpush3.msra.mxu0 %v638_v50  ;;  %v791_v23 = vld [vmem:[#allocation13 + $0x28] sm:$0xff]  ;;  %v790_v24 = vld [vmem:[#allocation13 + $0x20] sm:$0xff]  ;;  %v789_v25 = vld [vmem:[#allocation13 + $0x18] sm:$0xff] }
 0x34e   :  { %1206 = vmatprep.subr.mxu1 %v1468_v0  ;;  %1173 = vmatprep.subr.mxu0 %v1468_v0  ;;  %v788_v26 = vld [vmem:[#allocation13 + $0x10] sm:$0xff]  ;;  %v787_v27 = vld [vmem:[#allocation13 + $0x8] sm:$0xff]  ;;  %v786_v28 = vld [vmem:[#allocation13] sm:$0xff] }
 0x34f   :  { %1207 = vmatpush3.msra.mxu1 %v622_v51  ;;  %1174 = vmatpush3.msra.mxu0 %v637_v52  ;;  %v613_v29 = vld [vmem:[#allocation4] sm:$0xff]  ;;  %v895_v31 = vld [vmem:[#allocation15 + $0x70] sm:$0xff]  ;;  %v894_v32 = vld [vmem:[#allocation15 + $0x68] sm:$0xff] }
 0x350   :  { %1208 = vmatprep.subr.mxu1 %v1468_v0  ;;  %1175 = vmatprep.subr.mxu0 %v1468_v0  ;;  %v896_v30 = vld [vmem:[#allocation15 + $0x78] sm:$0xff]  ;;  %v893_v33 = vld [vmem:[#allocation15 + $0x60] sm:$0xff]  ;;  %v891_v35 = vld [vmem:[#allocation15 + $0x50] sm:$0xff] }
 0x351   :  { %1209 = vmatpush3.msra.mxu1 %v621_v53  ;;  %1176 = vmatpush3.msra.mxu0 %v636_v54  ;;  %v892_v34 = vld [vmem:[#allocation15 + $0x58] sm:$0xff]  ;;  %v890_v15 = vld [vmem:[#allocation15 + $0x48] sm:$0xff]  ;;  %v889_v36 = vld [vmem:[#allocation15 + $0x40] sm:$0xff] }
 0x352   :  { %1210 = vmatprep.subr.mxu1 %v1468_v0  ;;  %1177 = vmatprep.subr.mxu0 %v1468_v0  ;;  %v888_v60 = vld [vmem:[#allocation15 + $0x38] sm:$0xff]  ;;  %v887_v62 = vld [vmem:[#allocation15 + $0x30] sm:$0xff]  ;;  %v886_v1 = vld [vmem:[#allocation15 + $0x28] sm:$0xff] }
 0x353   :  { %1211 = vmatpush3.msra.mxu1 %v620_v55  ;;  %1178 = vmatpush3.msra.mxu0 %v635_v56  ;;  %v885_v37 = vld [vmem:[#allocation15 + $0x20] sm:$0xff]  ;;  %v884_v38 = vld [vmem:[#allocation15 + $0x18] sm:$0xff]  ;;  %v883_v39 = vld [vmem:[#allocation15 + $0x10] sm:$0xff] }
 0x354   :  { %1212 = vmatprep.subr.mxu1 %v1468_v0  ;;  %1179 = vmatprep.subr.mxu0 %v1468_v0  ;;  %v882_v40 = vld [vmem:[#allocation15 + $0x8] sm:$0xff]  ;;  %v881_v42 = vld [vmem:[#allocation15] sm:$0xff] }
 0x355   :  { %1213 = vmatpush3.msra.mxu1 %v619_v57  ;;  %1180 = vmatpush3.msra.mxu0 %v634_v58  ;;  %v1014_v48 = vld [vmem:[%s1755_s10] ss:$0 sm:$0xff]  ;;  %s1474_s10 = smov [#allocation16]  }
 0x356   :  { %1214 = vmatprep.subr.mxu1 %v1468_v0  ;;  %1181 = vmatprep.subr.mxu0 %v1468_v0  ;;  %v1015_v52 = vld [vmem:[%s1757_s12] ss:$0 sm:$0xff]  ;;  %s991_s14 = sshll.u32 %s1474_s10, 4  ;;  %s992_s14 = int_to_ptr.vmem [resolvable:$true] %s991_s14 }
 0x357   :  { %1215 = vmatpush3.msra.mxu1 %v618_v59  ;;  %1182 = vmatpush3.msra.mxu0 %v633_v61  ;;  %s1430_s12 = scalar_lea.vmem %s992_s14, 128  ;;  %p1435_p4 = scmp.lt.s32.totalorder %s992_s14, %s992_s14 }
 0x358   :  { %1216 = vmatprep.subr.mxu1 %v1468_v0  ;;  %1183 = vmatprep.subr.mxu0 %v1468_v0  ;;  %p1431_p3 = scmp.ne.s32.totalorder %s992_s14, %s1430_s12  ;;  %p1436_p5 = scmp.lt.s32.totalorder %s1430_s12, %s1430_s12 }
 0x359   :  { %1217 = vmatpush3.msra.mxu1 %v617_v63  ;;  %1184 = vmatpush3.msra.mxu0 %v632_v2 }
 0x35a   :  { %1218 = vmatprep.subr.mxu1 %v1468_v0  ;;  %1185 = vmatprep.subr.mxu0 %v1468_v0  ;;  %p1437_p6 = por %p1436_p5, %p1435_p4 }
 0x35b   :  { %1219 = vmatpush3.msra.mxu1 %v616_v3  ;;  %1186 = vmatpush3.msra.mxu0 %v631_v4 }
 0x35c   :  { %1220 = vmatprep.subr.mxu1 %v1468_v0  ;;  %1187 = vmatprep.subr.mxu0 %v1468_v0  ;;  %p1438_p7 = pnand %p1437_p6, %p1431_p3 }
 0x35d   :  { %1221 = vmatpush3.msra.mxu1 %v615_v5  ;;  %1188 = vmatpush3.msra.mxu0 %v630_v6 }
 0x35e   :  { %1222 = vmatprep.subr.mxu1 %v1468_v0  ;;  %1189 = vmatprep.mubr.msk.f32.mxu0 %vm1469_vm1, %v1468_v0 }
 0x35f   :  { %1223 = vmatpush3.msra.mxu1 %v614_v7  ;;  %1224 = vmatprep.mubr.msk.f32.mxu1 %vm1469_vm1, %v1468_v0 }
 0x360   :  { %1227 = vmatprep.subr.mxu0 %v1468_v0  ;;  %1225 = vmatmul.mubr.f32.vlgmr.msra.gmra.mxu1 %v604_v8 }
 0x361   :  { %1262 = vmatprep.subr.mxu1 %v1468_v0  ;;  %1294 = vmatprep.mubr.msk.f32.mxu1 %vm1469_vm1, %v1468_v0 }
 0x362   :  { %1263 = vmatpush3.msra.mxu1 %v896_v30 }
 0x363   :  { %1264 = vmatprep.subr.mxu1 %v1468_v0 }
 0x364   :  { %1265 = vmatpush3.msra.mxu1 %v895_v31 }
 0x365   :  { %1266 = vmatprep.subr.mxu1 %v1468_v0 }
 0x366   :  { %1267 = vmatpush3.msra.mxu1 %v894_v32 }
 0x367   :  { %1268 = vmatprep.subr.mxu1 %v1468_v0 }
 0x368   :  { %1269 = vmatpush3.msra.mxu1 %v893_v33 }
 0x369   :  { %1270 = vmatprep.subr.mxu1 %v1468_v0 }
 0x36a   :  { %1271 = vmatpush3.msra.mxu1 %v892_v34 }
 0x36b   :  { %1272 = vmatprep.subr.mxu1 %v1468_v0 }
 0x36c   :  { %1273 = vmatpush3.msra.mxu1 %v891_v35 }
 0x36d   :  { %1274 = vmatprep.subr.mxu1 %v1468_v0 }
 0x36e   :  { %1275 = vmatpush3.msra.mxu1 %v890_v15 }
 0x36f   :  { %1276 = vmatprep.subr.mxu1 %v1468_v0 }
 0x370   :  { %1277 = vmatpush3.msra.mxu1 %v889_v36 }
 0x371   :  { %1278 = vmatprep.subr.mxu1 %v1468_v0 }
 0x372   :  { %1279 = vmatpush3.msra.mxu1 %v888_v60 }
 0x373   :  { %1280 = vmatprep.subr.mxu1 %v1468_v0 }
 0x374   :  { %1281 = vmatpush3.msra.mxu1 %v887_v62 }
 0x375   :  { %1282 = vmatprep.subr.mxu1 %v1468_v0 }
 0x376   :  { %1283 = vmatpush3.msra.mxu1 %v886_v1 }
 0x377   :  { %1284 = vmatprep.subr.mxu1 %v1468_v0 }
 0x378   :  { %1285 = vmatpush3.msra.mxu1 %v885_v37 }
 0x379   :  { %1286 = vmatprep.subr.mxu1 %v1468_v0 }
 0x37a   :  { %1287 = vmatpush3.msra.mxu1 %v884_v38 }
 0x37b   :  { %1288 = vmatprep.subr.mxu1 %v1468_v0 }
 0x37c   :  { %1289 = vmatpush3.msra.mxu1 %v883_v39 }
 0x37d   :  { %1290 = vmatprep.subr.mxu1 %v1468_v0 }
 0x37e   :  { %1291 = vmatpush3.msra.mxu1 %v882_v40 }
 0x37f   :  { %1292 = vmatprep.subr.mxu1 %v1468_v0 }
 0x380   :  { %1293 = vmatpush3.msra.mxu1 %v881_v42 }
 0x3bb   :  { %v610_v10 = vpop.permute.xlu0 %609 }
 0x3bc   :  { %v612_v11 = vmul.f32 %v610_v10, %v605_v9 }
 0x3be   :  { %1190 = vmatmul.mubr.f32.vlgmr.msra.gmra.mxu0 %v612_v11 }
 0x3bf   :  { %1228 = vmatpush3.msra.mxu0 %v801_v12  ;;  %1259 = vmatprep.mubr.msk.f32.mxu0 %vm1469_vm1, %v1468_v0 }
 0x3c0   :  { %1229 = vmatprep.subr.mxu0 %v1468_v0 }
 0x3c1   :  { %1230 = vmatpush3.msra.mxu0 %v800_v13 }
 0x3c2   :  { %1231 = vmatprep.subr.mxu0 %v1468_v0 }
 0x3c3   :  { %1232 = vmatpush3.msra.mxu0 %v799_v14 }
 0x3c4   :  { %1233 = vmatprep.subr.mxu0 %v1468_v0 }
 0x3c5   :  { %1234 = vmatpush3.msra.mxu0 %v798_v16 }
 0x3c6   :  { %1235 = vmatprep.subr.mxu0 %v1468_v0 }
 0x3c7   :  { %1236 = vmatpush3.msra.mxu0 %v797_v17 }
 0x3c8   :  { %1237 = vmatprep.subr.mxu0 %v1468_v0 }
 0x3c9   :  { %1238 = vmatpush3.msra.mxu0 %v796_v18 }
 0x3ca   :  { %1239 = vmatprep.subr.mxu0 %v1468_v0 }
 0x3cb   :  { %1240 = vmatpush3.msra.mxu0 %v795_v19 }
 0x3cc   :  { %1241 = vmatprep.subr.mxu0 %v1468_v0 }
 0x3cd   :  { %1242 = vmatpush3.msra.mxu0 %v794_v20 }
 0x3ce   :  { %1243 = vmatprep.subr.mxu0 %v1468_v0 }
 0x3cf   :  { %1244 = vmatpush3.msra.mxu0 %v793_v21 }
 0x3d0   :  { %1245 = vmatprep.subr.mxu0 %v1468_v0 }
 0x3d1   :  { %1246 = vmatpush3.msra.mxu0 %v792_v22 }
 0x3d2   :  { %1247 = vmatprep.subr.mxu0 %v1468_v0 }
 0x3d3   :  { %1248 = vmatpush3.msra.mxu0 %v791_v23 }
 0x3d4   :  { %1249 = vmatprep.subr.mxu0 %v1468_v0 }
 0x3d5   :  { %1250 = vmatpush3.msra.mxu0 %v790_v24 }
 0x3d6   :  { %1251 = vmatprep.subr.mxu0 %v1468_v0 }
 0x3d7   :  { %1252 = vmatpush3.msra.mxu0 %v789_v25 }
 0x3d8   :  { %1253 = vmatprep.subr.mxu0 %v1468_v0 }
 0x3d9   :  { %1254 = vmatpush3.msra.mxu0 %v788_v26 }
 0x3da   :  { %1255 = vmatprep.subr.mxu0 %v1468_v0 }
 0x3db   :  { %1256 = vmatpush3.msra.mxu0 %v787_v27 }
 0x3dc   :  { %1257 = vmatprep.subr.mxu0 %v1468_v0 }
 0x3dd   :  { %1258 = vmatpush3.msra.mxu0 %v786_v28 }
 0x3de   :  { %1260 = vmatmul.mubr.f32.vlgmr.msra.gmra.mxu0 %v613_v29 }
 0x420   :  { %v782_v41 = vpop.f32.mrf.mxu1 }
 0x422   :  { %v1226_v43 = vpop.f32.mrf.mxu1 }
 0x47e   :  { %v712_v44 = vpop.f32.mrf.mxu0 }
 0x47f   :  { %v783_v46 = vadd.f32 %v782_v41, %v712_v44 }
 0x480   :  { %v1191_v45 = vpop.f32.mrf.mxu0 }
 0x49e   :  { %v868_v47 = vpop.f32.mrf.mxu0 }
 0x49f   :  { %v872_v49 = vadd.f32 %v868_v47, %v783_v46 }
 0x4a0   :  { %v1261_v50 = vpop.f32.mrf.mxu0 }
 0x4a1   :  { %v880_v51 = vadd.f32 %v1014_v48, %v872_v49 }
 0x4a3   :  { %1295 = vmatmul.mubr.f32.vlgmr.msra.gmra.mxu1 %v880_v51 }
 0x563   :  { %v970_v0 = vpop.f32.mrf.mxu1 }
 0x564   :  { %v971_v53 = vadd.f32 %v1015_v52, %v970_v0 }
 0x565   :  { %v1296_v54 = vpop.f32.mrf.mxu1 }
 0x566   :  { %974 = vmax.xlane.f32.xlu0 %v971_v53 }
 0x5ef   :  { %v975_v55 = vpop.xlane.xlu0 %974 }
 0x5f0   :  { %v976_v56 = vsub.f32 %v971_v53, %v975_v55 }
 0x5f2   :  { %v977_v57 = vmul.f32 1.442695, %v976_v56 }
 0x5f4   :  { %1314 = vpow2.f32 %v977_v57 }
 0x601   :  { %v1315_v58 = vpop.eup %1314 }
 0x602   :  { %979 = vadd.xlane.f32.xlu1 %v1315_v58 }
 0x68b   :  { %v980_v59 = vpop.xlane.xlu1 %979 }
 0x68c   :  { %1316 = vlog2.f32 %v980_v59 }
 0x699   :  { %v1317_v61 = vpop.eup %1316 }
 0x69a   :  { %v982_v63 = vmul.f32 0.6931472, %v1317_v61 }
 0x69c   :  { %v983_v2 = vsub.f32 %v976_v56, %v982_v63 }
 0x69e   :  { %984 = vst [vmem:[#allocation16] sm:$0xff] %v983_v2 }
 0x69f   :  { %1441 = shalt.err (!%p1438_p7)
}
 0x6a0   :  { %994 = dma.vmem_to_hbm [thread:$0]  %s992_s14, 128, %s1758_s13, [#allocation9]  }
 0x6a1   :  { %1458 = dma.done.wait [#allocation9], 128  }
 0x6a2   :  { %1459 = vsyncadd [#allocation9], 4294967168 }
 0x6a3   :  { %998 = vsyncpa [#allocation8], 1 }
 0x6a4   :  { %999 = vsyncpa [#allocation11], 1 }
 0x6a5   :  { %1000 = vsyncpa [#allocation14], 1 }
 0x6a6   :  { %1001 = vsyncpa [#allocation9], 1 }

// kernel: tpu_custom_call.1
= control target key start
LH: loop header
LB: loop body
LE: loop exit
PB: predicated region body
PF: predicated region fallthrough
CT: control target
= control target key end

     0   :  { %s1745_s0 = inlined_call_operand.vmem [shape: s32[2], index: 0, kind: input, shape index: {}]   ;;  %s1746_s1 = inlined_call_operand.vmem [shape: s32[1,16], index: 1, kind: input, shape index: {}]   ;;  %s1747_s2 = inlined_call_operand.vmem [shape: s32[8,1], index: 2, kind: input, shape index: {}]   ;;  %s1748_s3 = inlined_call_operand.vmem [shape: f32[8,1], index: 3, kind: input, shape index: {}]   ;;  %s1749_s4 = inlined_call_operand.vmem [shape: f32[16,128], index: 4, kind: input, shape index: {}]   ;;  %s1750_s5 = inlined_call_operand.hbm [shape: f32[128,128], index: 5, kind: input, shape index: {}]   ;;  %s1751_s6 = inlined_call_operand.vmem [shape: f32[1,128], index: 6, kind: input, shape index: {}]   ;;  %s1752_s7 = inlined_call_operand.hbm [shape: f32[128,128], index: 7, kind: input, shape index: {}]   ;;  %s1753_s8 = inlined_call_operand.hbm [shape: f32[128,128], index: 8, kind: input, shape index: {}]   ;;  %s1754_s9 = inlined_call_operand.hbm [shape: f32[128,128], index: 9, kind: input, shape index: {}]   ;;  %s1755_s10 = inlined_call_operand.vmem [shape: f32[1,128], index: 10, kind: input, shape index: {}]   ;;  %s1756_s11 = inlined_call_operand.hbm [shape: f32[128,128], index: 11, kind: input, shape index: {}]   ;;  %s1757_s12 = inlined_call_operand.vmem [shape: f32[1,128], index: 12, kind: input, shape index: {}]   ;;  %s1758_s13 = inlined_call_operand.hbm [shape: f32[8,128], index: 13, kind: output, shape index: {}]  }
   0x1   :  { %s18_s27 = sshll.u32 %s1745_s0, 4  ;;  %s19_s27 = int_to_ptr.vmem [resolvable:$true] %s18_s27 }
   0x2   :  { %s1318_s28 = scalar_lea.vmem %s19_s27, 16  ;;  %p1323_p1 = scmp.lt.s32.totalorder %s19_s27, %s19_s27 }
   0x3   :  { %p1319_p0 = scmp.ne.s32.totalorder %s19_s27, %s1318_s28  ;;  %p1324_p2 = scmp.lt.s32.totalorder %s1318_s28, %s1318_s28 }
   0x5   :  { %p1325_p3 = por %p1324_p2, %p1323_p1 }
   0x7   :  { %p1326_p4 = pnand %p1325_p3, %p1319_p0 }
   0x9   :  { %1329 = shalt.err (!%p1326_p4)  }
   0xa   :  { %s1460_s29 = smov [#allocation6]  }
   0xb   :  { %21 = dma.vmem_to_smem %s19_s27, 16, %s1460_s29, [#allocation5] }
   0xc   :  { %1450 = dma.done.wait [#allocation5], 16 }
   0xd   :  { %1451 = vsyncadd [#allocation5], 4294967280 }
   0xe   :  { %23 = sfence }
   0xf   :  { %24 = vsyncpa [#allocation8], 0 }
  0x10   :  { %25 = vsyncpa [#allocation11], 0 }
  0x11   :  { %26 = vsyncpa [#allocation14], 0 }
  0x12   :  { %27 = vsyncpa [#allocation9], 0  ;;  %s1461_s30 = smov [#allocation10]   ;;  %s1462_s0 = smov [#allocation13]  }
  0x13   :  { %s55_s14 = sshll.u32 %s1461_s30, 4  ;;  %s79_s15 = sshll.u32 %s1462_s0, 4  ;;  %s56_s14 = int_to_ptr.vmem [resolvable:$true] %s55_s14  ;;  %s80_s15 = int_to_ptr.vmem [resolvable:$true] %s79_s15 }
  0x14   :  { %s1338_s16 = scalar_lea.vmem %s56_s14, 2048  ;;  %p1343_p6 = scmp.lt.s32.totalorder %s56_s14, %s56_s14 }
  0x15   :  { %p1339_p5 = scmp.ne.s32.totalorder %s56_s14, %s1338_s16  ;;  %p1344_p7 = scmp.lt.s32.totalorder %s1338_s16, %s1338_s16 }
  0x17   :  { %p1345_p8 = por %p1344_p7, %p1343_p6 }
  0x19   :  { %p1346_p9 = pnand %p1345_p8, %p1339_p5 }
  0x1b   :  { %1349 = shalt.err (!%p1346_p9)
}
  0x1c   :  { %s1463_s17 = smov 128   ;;  %s1464_s18 = smov 8  }
  0x1d   :  { %61 = dma.hbm_to_vmem [thread:$0]  %s1752_s7, 2048, %s56_s14, [#allocation11], %s1463_s17, %s1463_s17, %s1464_s18  }
  0x1e   :  { %s1358_s21 = scalar_lea.vmem %s80_s15, 2048  ;;  %p1363_p11 = scmp.lt.s32.totalorder %s80_s15, %s80_s15 }
  0x1f   :  { %p1359_p10 = scmp.ne.s32.totalorder %s80_s15, %s1358_s21  ;;  %p1364_p12 = scmp.lt.s32.totalorder %s1358_s21, %s1358_s21 }
  0x21   :  { %p1365_p13 = por %p1364_p12, %p1363_p11 }
  0x23   :  { %p1366_p0 = pnand %p1365_p13, %p1359_p10 }
  0x25   :  { %1369 = shalt.err (!%p1366_p0)
}
  0x26   :  { %85 = dma.hbm_to_vmem [thread:$0]  %s1754_s9, 2048, %s80_s15, [#allocation14], %s1463_s17, %s1463_s17, %s1464_s18  }
  0x27   :  { %s1465_s24 = smov [#allocation7]   ;;  %s1466_s26 = smov [#allocation12]  }
  0x28   :  { %s41_s25 = sshll.u32 %s1465_s24, 4  ;;  %s67_s27 = sshll.u32 %s1466_s26, 4  ;;  %s42_s25 = int_to_ptr.vmem [resolvable:$true] %s41_s25  ;;  %s68_s27 = int_to_ptr.vmem [resolvable:$true] %s67_s27 }
  0x29   :  { %s1378_s7 = scalar_lea.vmem %s42_s25, 2048  ;;  %p1383_p2 = scmp.lt.s32.totalorder %s42_s25, %s42_s25 }
  0x2a   :  { %p1379_p1 = scmp.ne.s32.totalorder %s42_s25, %s1378_s7  ;;  %p1384_p3 = scmp.lt.s32.totalorder %s1378_s7, %s1378_s7 }
  0x2c   :  { %p1385_p4 = por %p1384_p3, %p1383_p2 }
  0x2e   :  { %p1386_p5 = pnand %p1385_p4, %p1379_p1 }
  0x30   :  { %1389 = shalt.err (!%p1386_p5)
}
  0x31   :  { %47 = dma.hbm_to_vmem [thread:$0]  %s1750_s5, 2048, %s42_s25, [#allocation8], %s1463_s17, %s1463_s17, %s1464_s18  }
  0x32   :  { %s1398_s9 = scalar_lea.vmem %s68_s27, 2048  ;;  %p1403_p7 = scmp.lt.s32.totalorder %s68_s27, %s68_s27 }
  0x33   :  { %p1399_p6 = scmp.ne.s32.totalorder %s68_s27, %s1398_s9  ;;  %p1404_p8 = scmp.lt.s32.totalorder %s1398_s9, %s1398_s9 }
  0x35   :  { %p1405_p9 = por %p1404_p8, %p1403_p7 }
  0x37   :  { %p1406_p10 = pnand %p1405_p9, %p1399_p6 }
  0x39   :  { %1409 = shalt.err (!%p1406_p10)
}
  0x3a   :  { %73 = dma.hbm_to_vmem [thread:$0]  %s1753_s8, 2048, %s68_s27, [#allocation11], %s1463_s17, %s1463_s17, %s1464_s18  }
  0x3b   :  { %s1467_s0 = smov [#allocation15]  }
  0x3c   :  { %s93_s15 = sshll.u32 %s1467_s0, 4  ;;  %s94_s15 = int_to_ptr.vmem [resolvable:$true] %s93_s15 }
  0x3d   :  { %s1418_s16 = scalar_lea.vmem %s94_s15, 2048  ;;  %p1423_p12 = scmp.lt.s32.totalorder %s94_s15, %s94_s15 }
  0x3e   :  { %p1419_p11 = scmp.ne.s32.totalorder %s94_s15, %s1418_s16  ;;  %p1424_p13 = scmp.lt.s32.totalorder %s1418_s16, %s1418_s16 }
  0x40   :  { %p1425_p0 = por %p1424_p13, %p1423_p12 }
  0x42   :  { %p1426_p1 = pnand %p1425_p0, %p1419_p11 }
  0x44   :  { %1429 = shalt.err (!%p1426_p1)
}
  0x45   :  { %99 = dma.hbm_to_vmem [thread:$0]  %s1756_s11, 2048, %s94_s15, [#allocation14], %s1463_s17, %s1463_s17, %s1464_s18  }
  0x46   :  { %1452 = dma.done.wait [#allocation8], 2048  }
  0x47   :  { %1453 = vsyncadd [#allocation8], 4294965248 }
  0x48   :  { %1454 = dma.done.wait [#allocation11], 4096  }
  0x49   :  { %1455 = vsyncadd [#allocation11], 4294963200 }
  0x4a   :  { %1456 = dma.done.wait [#allocation14], 4096  }
  0x4b   :  { %1457 = vsyncadd [#allocation14], 4294963200  ;;  %s1578_s8 = sld [smem:[#allocation6 + $0x1]]  ;;  %v1468_v0 = vmov 0.0   ;;  %v231_v1 = vlaneseq  ;;  %v141_v3 = vld [vmem:[#allocation7 + $0x78] sm:$0xff]  ;;  %v140_v4 = vld [vmem:[#allocation7 + $0x70] sm:$0xff] }
  0x4c   :  { %123 = vst [vmem:[#allocation4] sm:$0xff] %v1468_v0  ;;  %121 = vst [vmem:[#allocation2] sm:$0xff] %v1468_v0  ;;  %1143 = vmatprep.subr.mxu1 %v1468_v0  ;;  %s1584_s20 = sld [smem:[#allocation6]]  ;;  %1108 = vmatprep.subr.mxu0 %v141_v3  ;;  %v139_v6 = vld [vmem:[#allocation7 + $0x68] sm:$0xff]  ;;  %v138_v8 = vld [vmem:[#allocation7 + $0x60] sm:$0xff]  ;;  %vm1469_vm1 = vmmov 0  }
  0x4d   :  { %122 = vst [vmem:[#allocation3] sm:$0xff] %v1468_v0  ;;  %v1587_v2 = vshrl.u32 %v231_v1, 7  ;;  %1109 = vmatpush3.msra.mxu0 %v141_v3  ;;  %v124_v9 = vld [vmem:[%s1749_s4] sm:$0xff]  ;;  %v137_v12 = vld [vmem:[#allocation7 + $0x58] sm:$0xff]  ;;  %v136_v14 = vld [vmem:[#allocation7 + $0x50] sm:$0xff]  ;;  %1147 = vmatprep.mubr.msk.f32.mxu1 %vm1469_vm1, %v1468_v0  ;;  %vm431_vm2 = vcmask 130048  }
  0x4e   :  { %1110 = vmatprep.subr.mxu0 %v140_v4  ;;  %1140 = vmatprep.mubr.f32.mxu0 %v124_v9  ;;  %v1008_v13 = vld [vmem:[%s1746_s1] ss:$0 sm:$0xff]  ;;  %v134_v20 = vld [vmem:[#allocation7 + $0x40] sm:$0xff]  ;;  %v133_v21 = vld [vmem:[#allocation7 + $0x38] sm:$0xff]  ;;  %vm412_vm3 = vcmask 1041409   ;;  %vm414_vm4 = vcmask 1042434  }
  0x4f   :  { %1111 = vmatpush3.msra.mxu0 %v140_v4  ;;  %v255_v10 = vsub.s32 1, %v1587_v2  ;;  %v244_v11 = vsub.s32 0, %v1587_v2  ;;  %v135_v18 = vld [vmem:[#allocation7 + $0x48] sm:$0xff]  ;;  %v266_v19 = vsub.s32 2, %v1587_v2  ;;  %v277_v23 = vsub.s32 3, %v1587_v2  ;;  %v132_v24 = vld [vmem:[#allocation7 + $0x30] sm:$0xff] }
  0x50   :  { %1112 = vmatprep.subr.mxu0 %v139_v6  ;;  %v131_v25 = vld [vmem:[#allocation7 + $0x28] sm:$0xff]  ;;  %v288_v27 = vsub.s32 4, %v1587_v2  ;;  %v130_v28 = vld [vmem:[#allocation7 + $0x20] sm:$0xff]  ;;  %v129_v29 = vld [vmem:[#allocation7 + $0x18] sm:$0xff]  ;;  %v299_v31 = vsub.s32 5, %v1587_v2  ;;  %v310_v35 = vsub.s32 6, %v1587_v2 }
  0x51   :  { %1113 = vmatpush3.msra.mxu0 %v139_v6  ;;  %v128_v32 = vld [vmem:[#allocation7 + $0x10] sm:$0xff]  ;;  %v127_v33 = vld [vmem:[#allocation7 + $0x8] sm:$0xff]  ;;  %v126_v36 = vld [vmem:[#allocation7] sm:$0xff]  ;;  %v321_v39 = vsub.s32 7, %v1587_v2  ;;  %vm416_vm5 = vcmask 1043459   ;;  %vm418_vm6 = vcmask 1044484  }
  0x52   :  { %v233_v5 = vstv %s1584_s20  ;;  %1114 = vmatprep.subr.mxu0 %v138_v8  ;;  %v125_v37 = vld [vmem:[%s1749_s4 + $0x8] sm:$0xff]  ;;  %v1006_v54 = vld [vmem:[%s1751_s6] ss:$0 sm:$0xff]  ;;  %vm420_vm7 = vcmask 1045509   ;;  %vm422_vm8 = vcmask 1046534   ;;  %vm424_vm9 = vcmask 1047559  }
  0x53   :  { %v234_v7 = vadd.s32 %v233_v5, %v1587_v2  ;;  %1115 = vmatpush3.msra.mxu0 %v138_v8  ;;  %s402_s6 = scalar_lea.vmem [#allocation2], %s1584_s20  ;;  %s429_s24 = scalar_lea.vmem [#allocation3], %s1584_s20 }
  0x54   :  { %1116 = vmatprep.subr.mxu0 %v137_v12  ;;  %p1011_p2 = scmp.le.s32.totalorder %s1578_s8, 0 }
  0x55   :  { %vm239_vm0 = vcmp.eq.s32.totalorder %v1008_v13, %v234_v7  ;;  %1117 = vmatpush3.msra.mxu0 %v137_v12  ;;  %s516_s27 = scalar_lea.vmem (!%p1011_p2), %s1747_s2, %s1584_s20  ;;  %s524_s2 = scalar_lea.vmem (!%p1011_p2), [#allocation4], %s1584_s20 }
  0x56   :  { %v1600_v15 = vsel %vm239_vm0, 1.0, %v1468_v0  ;;  %1118 = vmatprep.subr.mxu0 %v136_v14 }
  0x57   :  { %v256_v16 = vrot.slane %v1600_v15, %v255_v10  ;;  %v245_v17 = vrot.slane %v1600_v15, %v244_v11  ;;  %1119 = vmatpush3.msra.mxu0 %v136_v14  ;;  %v267_v22 = vrot.slane %v1600_v15, %v266_v19  ;;  %v278_v26 = vrot.slane %v1600_v15, %v277_v23 }
  0x58   :  { %1120 = vmatprep.subr.mxu0 %v135_v18  ;;  %v289_v30 = vrot.slane %v1600_v15, %v288_v27  ;;  %v300_v34 = vrot.slane %v1600_v15, %v299_v31  ;;  %v311_v38 = vrot.slane %v1600_v15, %v310_v35  ;;  %v322_v40 = vrot.slane %v1600_v15, %v321_v39 }
  0x59   :  { %258 = vbcast.lane.b32.xlu1 %v256_v16, 256  ;;  %247 = vbcast.lane.b32.xlu0 %v245_v17, 256 }
  0x5a   :  { %1121 = vmatpush3.msra.mxu0 %v135_v18 }
  0x5b   :  { %1122 = vmatprep.subr.mxu0 %v134_v20 }
  0x5c   :  { %1123 = vmatpush3.msra.mxu0 %v134_v20 }
  0x5d   :  { %262 = vbcast.lane.b32.xlu1 %v256_v16, 264  ;;  %251 = vbcast.lane.b32.xlu0 %v245_v17, 264 }
  0x5e   :  { %1124 = vmatprep.subr.mxu0 %v133_v21 }
  0x5f   :  { %1125 = vmatpush3.msra.mxu0 %v133_v21 }
  0x60   :  { %1126 = vmatprep.subr.mxu0 %v132_v24 }
  0x61   :  { %273 = vbcast.lane.b32.xlu1 %v267_v22, 264  ;;  %1127 = vmatpush3.msra.mxu0 %v132_v24 }
  0x62   :  { %269 = vbcast.lane.b32.xlu0 %v267_v22, 256  ;;  %1128 = vmatprep.subr.mxu0 %v131_v25 }
  0x63   :  { %1129 = vmatpush3.msra.mxu0 %v131_v25 }
  0x64   :  { %1130 = vmatprep.subr.mxu0 %v130_v28 }
  0x65   :  { %284 = vbcast.lane.b32.xlu1 %v278_v26, 264  ;;  %1131 = vmatpush3.msra.mxu0 %v130_v28 }
  0x66   :  { %280 = vbcast.lane.b32.xlu0 %v278_v26, 256  ;;  %1132 = vmatprep.subr.mxu0 %v129_v29 }
  0x67   :  { %1133 = vmatpush3.msra.mxu0 %v129_v29 }
  0x68   :  { %1134 = vmatprep.subr.mxu0 %v128_v32 }
  0x69   :  { %295 = vbcast.lane.b32.xlu1 %v289_v30, 264  ;;  %1135 = vmatpush3.msra.mxu0 %v128_v32 }
  0x6a   :  { %291 = vbcast.lane.b32.xlu0 %v289_v30, 256  ;;  %1136 = vmatprep.subr.mxu0 %v127_v33 }
  0x6b   :  { %1137 = vmatpush3.msra.mxu0 %v127_v33 }
  0x6c   :  { %1138 = vmatprep.subr.mxu0 %v126_v36 }
  0x6d   :  { %306 = vbcast.lane.b32.xlu1 %v300_v34, 264  ;;  %1139 = vmatpush3.msra.mxu0 %v126_v36 }
  0x6e   :  { %302 = vbcast.lane.b32.xlu0 %v300_v34, 256  ;;  %1141 = vmatmul.mubr.f32.vlgmr.msra.gmra.mxu0 %v125_v37 }
  0x71   :  { %317 = vbcast.lane.b32.xlu1 %v311_v38, 264 }
  0x72   :  { %313 = vbcast.lane.b32.xlu0 %v311_v38, 256 }
  0x75   :  { %328 = vbcast.lane.b32.xlu1 %v322_v40, 264 }
  0x76   :  { %324 = vbcast.lane.b32.xlu0 %v322_v40, 256 }
  0xcb   :  { %v259_v41 = vpop.permute.xlu1 %258  ;;  %v248_v42 = vpop.permute.xlu0 %247 }
  0xcf   :  { %v263_v43 = vpop.permute.xlu1 %262  ;;  %v252_v44 = vpop.permute.xlu0 %251 }
  0xd3   :  { %v274_v45 = vpop.permute.xlu1 %273 }
  0xd4   :  { %v270_v46 = vpop.permute.xlu0 %269 }
  0xd7   :  { %v285_v47 = vpop.permute.xlu1 %284 }
  0xd8   :  { %v281_v48 = vpop.permute.xlu0 %280 }
  0xdb   :  { %v296_v49 = vpop.permute.xlu1 %295 }
  0xdc   :  { %v292_v50 = vpop.permute.xlu0 %291 }
  0xdf   :  { %v307_v51 = vpop.permute.xlu1 %306 }
  0xe0   :  { %v303_v52 = vpop.permute.xlu0 %302 }
  0xe3   :  { %v318_v53 = vpop.permute.xlu1 %317 }
  0xe4   :  { %v314_v56 = vpop.permute.xlu0 %313 }
  0xe7   :  { %v329_v59 = vpop.permute.xlu1 %328 }
  0xe8   :  { %v325_v4 = vpop.permute.xlu0 %324 }
 0x12e   :  { %v1142_v55 = vpop.f32.mrf.mxu0 }
 0x12f   :  { %v221_v57 = vadd.f32 %v1142_v55, %v1006_v54 }
 0x130   :  { %v215_v58 = vpop.f32.mrf.mxu0 }
 0x131   :  { %v1624_v60 = vmax.f32 %v221_v57, 0.0  ;;  %v216_v61 = vadd.f32 %v1006_v54, %v215_v58 }
 0x133   :  { %v1626_v62 = vmax.f32 %v216_v61, 0.0  ;;  %v345_v63 = vmul.f32 %v329_v59, %v1624_v60  ;;  %1144 = vmatpush3.msra.mxu1 %v1624_v60  ;;  %v331_v2 = vmul.f32 %v252_v44, %v1624_v60  ;;  %v333_v3 = vmul.f32 %v263_v43, %v1624_v60 }
 0x134   :  { %v335_v5 = vmul.f32 %v274_v45, %v1624_v60  ;;  %v337_v6 = vmul.f32 %v285_v47, %v1624_v60  ;;  %v339_v7 = vmul.f32 %v296_v49, %v1624_v60  ;;  %v341_v8 = vmul.f32 %v307_v51, %v1624_v60  ;;  %1145 = vmatprep.subr.mxu1 %v1468_v0 }
 0x135   :  { %v330_v9 = vmul.f32 %v248_v42, %v1626_v62  ;;  %v332_v10 = vmul.f32 %v259_v41, %v1626_v62  ;;  %v334_v11 = vmul.f32 %v270_v46, %v1626_v62  ;;  %v336_v12 = vmul.f32 %v281_v48, %v1626_v62  ;;  %1146 = vmatpush3.msra.mxu1 %v1626_v62 }
 0x136   :  { %v338_v13 = vmul.f32 %v292_v50, %v1626_v62  ;;  %v340_v14 = vmul.f32 %v303_v52, %v1626_v62  ;;  %v342_v16 = vmul.f32 %v314_v56, %v1626_v62  ;;  %v343_v17 = vmul.f32 %v318_v53, %v1624_v60  ;;  %1148 = vmatmul.mubr.msk.f32.vlgmr.msra.gmra.mxu1 %vm431_vm2, %v1600_v15 }
 0x137   :  { %v344_v18 = vmul.f32 %v325_v4, %v1626_v62  ;;  %v346_v19 = vmax.f32 %v330_v9, %v331_v2  ;;  %v353_v20 = vmax.f32 %v332_v10, %v333_v3  ;;  %v360_v21 = vmax.f32 %v334_v11, %v335_v5 }
 0x138   :  { %v367_v22 = vmax.f32 %v336_v12, %v337_v6  ;;  %v374_v23 = vmax.f32 %v338_v13, %v339_v7  ;;  %v381_v24 = vmax.f32 %v340_v14, %v341_v8  ;;  %v388_v25 = vmax.f32 %v342_v16, %v343_v17 }
 0x139   :  { %v347_v26 = vrot.slane %v346_v19, 4  ;;  %v354_v27 = vrot.slane %v353_v20, 4  ;;  %v361_v28 = vrot.slane %v360_v21, 4  ;;  %v395_v29 = vmax.f32 %v344_v18, %v345_v63 }
 0x13a   :  { %v368_v30 = vrot.slane %v367_v22, 4  ;;  %v375_v31 = vrot.slane %v374_v23, 4  ;;  %v382_v32 = vrot.slane %v381_v24, 4  ;;  %v389_v33 = vrot.slane %v388_v25, 4 }
 0x13b   :  { %v348_v34 = vmax.f32 %v346_v19, %v347_v26  ;;  %v355_v35 = vmax.f32 %v353_v20, %v354_v27  ;;  %v362_v15 = vmax.f32 %v360_v21, %v361_v28  ;;  %v396_v36 = vrot.slane %v395_v29, 4  ;;  %v403_v19 = vld [vmem:[%s402_s6] sm:$0xff] }
 0x13c   :  { %v369_v37 = vmax.f32 %v367_v22, %v368_v30  ;;  %v376_v38 = vmax.f32 %v374_v23, %v375_v31  ;;  %v383_v39 = vmax.f32 %v381_v24, %v382_v32  ;;  %v390_v40 = vmax.f32 %v388_v25, %v389_v33  ;;  %v430_v24 = vld [vmem:[%s429_s24] sm:$0xff] }
 0x13d   :  { %v349_v41 = vrot.slane %v348_v34, 2  ;;  %v356_v42 = vrot.slane %v355_v35, 2  ;;  %v363_v43 = vrot.slane %v362_v15, 2  ;;  %v397_v44 = vmax.f32 %v395_v29, %v396_v36 }
 0x13e   :  { %v370_v45 = vrot.slane %v369_v37, 2  ;;  %v377_v46 = vrot.slane %v376_v38, 2  ;;  %v384_v47 = vrot.slane %v383_v39, 2  ;;  %v391_v48 = vrot.slane %v390_v40, 2 }
 0x13f   :  { %v350_v49 = vmax.f32 %v348_v34, %v349_v41  ;;  %v357_v50 = vmax.f32 %v355_v35, %v356_v42  ;;  %v364_v51 = vmax.f32 %v362_v15, %v363_v43  ;;  %v398_v52 = vrot.slane %v397_v44, 2 }
 0x140   :  { %v371_v53 = vmax.f32 %v369_v37, %v370_v45  ;;  %v378_v54 = vmax.f32 %v376_v38, %v377_v46  ;;  %v385_v55 = vmax.f32 %v383_v39, %v384_v47  ;;  %v392_v56 = vmax.f32 %v390_v40, %v391_v48 }
 0x141   :  { %v351_v57 = vrot.slane %v350_v49, 1  ;;  %v358_v58 = vrot.slane %v357_v50, 1  ;;  %v365_v59 = vrot.slane %v364_v51, 1  ;;  %v399_v61 = vmax.f32 %v397_v44, %v398_v52 }
 0x142   :  { %v372_v63 = vrot.slane %v371_v53, 1  ;;  %v379_v2 = vrot.slane %v378_v54, 1  ;;  %v386_v6 = vrot.slane %v385_v55, 1  ;;  %v393_v7 = vrot.slane %v392_v56, 1 }
 0x143   :  { %v352_v3 = vmax.f32 %v350_v49, %v351_v57  ;;  %v359_v4 = vmax.f32 %v357_v50, %v358_v58  ;;  %v366_v5 = vmax.f32 %v364_v51, %v365_v59  ;;  %v400_v9 = vrot.slane %v399_v61, 1 }
 0x144   :  { %v373_v8 = vmax.f32 %v371_v53, %v372_v63  ;;  %v380_v11 = vmax.f32 %v378_v54, %v379_v2  ;;  %v387_v13 = vmax.f32 %v385_v55, %v386_v6  ;;  %v394_v16 = vmax.f32 %v392_v56, %v393_v7 }
 0x145   :  { %v413_v10 = vsel %vm412_vm3, %v359_v4, %v352_v3  ;;  %v401_v18 = vmax.f32 %v399_v61, %v400_v9 }
 0x146   :  { %v415_v12 = vsel %vm414_vm4, %v366_v5, %v413_v10 }
 0x147   :  { %v417_v14 = vsel %vm416_vm5, %v373_v8, %v415_v12 }
 0x148   :  { %v419_v17 = vsel %vm418_vm6, %v380_v11, %v417_v14 }
 0x149   :  { %v421_v20 = vsel %vm420_vm7, %v387_v13, %v419_v17 }
 0x14a   :  { %v423_v21 = vsel %vm422_vm8, %v394_v16, %v421_v20 }
 0x14b   :  { %v425_v22 = vsel %vm424_vm9, %v401_v18, %v423_v21 }
 0x14c   :  { %v427_v23 = vmax.f32 %v403_v19, %v425_v22 }
 0x14e   :  { %428 = vst [vmem:[%s402_s6] sm:$0xff] %v427_v23 }
 0x1f5   :  { %510 = sbr.rel (%p1011_p2) target bundleno = 830 (0x33e), region = 77 }
 0x1f6   :  { %v501_v25 = vpop.f32.mrf.mxu1 }
 0x1f7   :  { %v505_v26 = vadd.f32 %v501_v25, %v430_v24 }
 0x1f8   :  { %v1149_v27 = vpop.f32.mrf.mxu1 }
 0x1f9   :  { %506 = vst [vmem:[%s429_s24] sm:$0xff] %v505_v26 }
 0x1fa   :  { %v1470_v28 = vmov 0   ;;  %v517_v29 = vld [vmem:[%s516_s27] sm:$0xff]  ;;  %v1471_v30 = vmov 0.0   ;;  %vm1472_vm10 = vmmov 0   ;;  %v513_v31 = vand.u32 127, %v231_v1 }
 0x1fb   :  { %1312 = vset.pattern.permute.xlu0 %v1470_v28  ;;  %1150 = vmatprep.subr.mxu0 %v1471_v30  ;;  %v525_v34 = vld [vmem:[%s524_s2] sm:$0xff] }
 0x1fc   :  { %519 = vperm.xlu0 %1312, %v517_v29   ;;  %1151 = vmatpush3.msra.mxu0 %v1624_v60 }
 0x1fd   :  { %1152 = vmatprep.subr.mxu0 %v1471_v30  ;;  %1154 = vmatprep.mubr.msk.f32.mxu0 %vm1472_vm10, %v1471_v30 }
 0x1fe   :  { %1153 = vmatpush3.msra.mxu0 %v1626_v62 }
 0x277   :  { %v520_v32 = vpop.permute.xlu0 %519 }
 0x278   :  { %vm521_vm11 = vcmp.eq.s32.totalorder %v513_v31, %v520_v32 }
 0x279   :  { %v1012_v33 = vsel %vm521_vm11, 1.0, %v1471_v30 }
 0x27a   :  { %1155 = vmatmul.mubr.msk.f32.vlgmr.msra.gmra.mxu0 %vm431_vm2, %v1012_v33 }
 0x33a   :  { %v595_v35 = vpop.f32.mrf.mxu0 }
 0x33b   :  { %v599_v15 = vadd.f32 %v595_v35, %v525_v34 }
 0x33c   :  { %v1156_v36 = vpop.f32.mrf.mxu0 }
 0x33d   :  { %600 = vst [vmem:[%s524_s2] sm:$0xff] %v599_v15 }
 0x33e PF:  { %v606_v60 = vld [vmem:[%s1748_s3] sm:$0xff]  ;;  %1157 = vmatprep.subr.mxu0 %v1468_v0  ;;  %v645_v62 = vld [vmem:[#allocation12 + $0x78] sm:$0xff]  ;;  %1192 = vmatprep.subr.mxu1 %v1468_v0  ;;  %v1473_v37 = vmov 0   ;;  %v644_v38 = vld [vmem:[#allocation12 + $0x70] sm:$0xff] }
 0x33f   :  { %v629_v1 = vld [vmem:[#allocation10 + $0x78] sm:$0xff]  ;;  %1313 = vset.pattern.permute.xlu0 %v1473_v37  ;;  %1158 = vmatpush3.msra.mxu0 %v645_v62  ;;  %v628_v39 = vld [vmem:[#allocation10 + $0x70] sm:$0xff]  ;;  %v643_v40 = vld [vmem:[#allocation12 + $0x68] sm:$0xff] }
 0x340   :  { %609 = vperm.xlu0 %1313, %v606_v60   ;;  %1159 = vmatprep.subr.mxu0 %v1468_v0  ;;  %v627_v41 = vld [vmem:[#allocation10 + $0x68] sm:$0xff]  ;;  %v642_v42 = vld [vmem:[#allocation12 + $0x60] sm:$0xff]  ;;  %v641_v44 = vld [vmem:[#allocation12 + $0x58] sm:$0xff] }
 0x341   :  { %1193 = vmatpush3.msra.mxu1 %v629_v1  ;;  %1160 = vmatpush3.msra.mxu0 %v644_v38  ;;  %v626_v43 = vld [vmem:[#allocation10 + $0x60] sm:$0xff]  ;;  %v625_v45 = vld [vmem:[#allocation10 + $0x58] sm:$0xff]  ;;  %v640_v46 = vld [vmem:[#allocation12 + $0x50] sm:$0xff] }
 0x342   :  { %1194 = vmatprep.subr.mxu1 %v1468_v0  ;;  %1161 = vmatprep.subr.mxu0 %v1468_v0  ;;  %v624_v47 = vld [vmem:[#allocation10 + $0x50] sm:$0xff]  ;;  %v639_v48 = vld [vmem:[#allocation12 + $0x48] sm:$0xff]  ;;  %v638_v50 = vld [vmem:[#allocation12 + $0x40] sm:$0xff] }
 0x343   :  { %1195 = vmatpush3.msra.mxu1 %v628_v39  ;;  %1162 = vmatpush3.msra.mxu0 %v643_v40  ;;  %v623_v49 = vld [vmem:[#allocation10 + $0x48] sm:$0xff]  ;;  %v622_v51 = vld [vmem:[#allocation10 + $0x40] sm:$0xff]  ;;  %v637_v52 = vld [vmem:[#allocation12 + $0x38] sm:$0xff] }
 0x344   :  { %1196 = vmatprep.subr.mxu1 %v1468_v0  ;;  %1163 = vmatprep.subr.mxu0 %v1468_v0  ;;  %v621_v53 = vld [vmem:[#allocation10 + $0x38] sm:$0xff]  ;;  %v636_v54 = vld [vmem:[#allocation12 + $0x30] sm:$0xff]  ;;  %v635_v56 = vld [vmem:[#allocation12 + $0x28] sm:$0xff] }
 0x345   :  { %1197 = vmatpush3.msra.mxu1 %v627_v41  ;;  %1164 = vmatpush3.msra.mxu0 %v642_v42  ;;  %v620_v55 = vld [vmem:[#allocation10 + $0x30] sm:$0xff]  ;;  %v619_v57 = vld [vmem:[#allocation10 + $0x28] sm:$0xff]  ;;  %v634_v58 = vld [vmem:[#allocation12 + $0x20] sm:$0xff] }
 0x346   :  { %1198 = vmatprep.subr.mxu1 %v1468_v0  ;;  %1165 = vmatprep.subr.mxu0 %v1468_v0  ;;  %v618_v59 = vld [vmem:[#allocation10 + $0x20] sm:$0xff]  ;;  %v633_v61 = vld [vmem:[#allocation12 + $0x18] sm:$0xff]  ;;  %v632_v2 = vld [vmem:[#allocation12 + $0x10] sm:$0xff] }
 0x347   :  { %1199 = vmatpush3.msra.mxu1 %v626_v43  ;;  %1166 = vmatpush3.msra.mxu0 %v641_v44  ;;  %v617_v63 = vld [vmem:[#allocation10 + $0x18] sm:$0xff]  ;;  %v616_v3 = vld [vmem:[#allocation10 + $0x10] sm:$0xff]  ;;  %v631_v4 = vld [vmem:[#allocation12 + $0x8] sm:$0xff] }
 0x348   :  { %1200 = vmatprep.subr.mxu1 %v1468_v0  ;;  %1167 = vmatprep.subr.mxu0 %v1468_v0  ;;  %v615_v5 = vld [vmem:[#allocation10 + $0x8] sm:$0xff]  ;;  %v630_v6 = vld [vmem:[#allocation12] sm:$0xff]  ;;  %v605_v9 = vld [vmem:[#allocation3] sm:$0xff] }
 0x349   :  { %1201 = vmatpush3.msra.mxu1 %v625_v45  ;;  %1168 = vmatpush3.msra.mxu0 %v640_v46  ;;  %v614_v7 = vld [vmem:[#allocation10] sm:$0xff]  ;;  %v604_v8 = vld [vmem:[#allocation2] sm:$0xff]  ;;  %v801_v12 = vld [vmem:[#allocation13 + $0x78] sm:$0xff] }
 0x34a   :  { %1202 = vmatprep.subr.mxu1 %v1468_v0  ;;  %1169 = vmatprep.subr.mxu0 %v1468_v0  ;;  %v800_v13 = vld [vmem:[#allocation13 + $0x70] sm:$0xff]  ;;  %v799_v14 = vld [vmem:[#allocation13 + $0x68] sm:$0xff]  ;;  %v798_v16 = vld [vmem:[#allocation13 + $0x60] sm:$0xff] }
 0x34b   :  { %1203 = vmatpush3.msra.mxu1 %v624_v47  ;;  %1170 = vmatpush3.msra.mxu0 %v639_v48  ;;  %v797_v17 = vld [vmem:[#allocation13 + $0x58] sm:$0xff]  ;;  %v796_v18 = vld [vmem:[#allocation13 + $0x50] sm:$0xff]  ;;  %v795_v19 = vld [vmem:[#allocation13 + $0x48] sm:$0xff] }
 0x34c   :  { %1204 = vmatprep.subr.mxu1 %v1468_v0  ;;  %1171 = vmatprep.subr.mxu0 %v1468_v0  ;;  %v794_v20 = vld [vmem:[#allocation13 + $0x40] sm:$0xff]  ;;  %v793_v21 = vld [vmem:[#allocation13 + $0x38] sm:$0xff]  ;;  %v792_v22 = vld [vmem:[#allocation13 + $0x30] sm:$0xff] }
 0x34d   :  { %1205 = vmatpush3.msra.mxu1 %v623_v49  ;;  %1172 = vmatpush3.msra.mxu0 %v638_v50  ;;  %v791_v23 = vld [vmem:[#allocation13 + $0x28] sm:$0xff]  ;;  %v790_v24 = vld [vmem:[#allocation13 + $0x20] sm:$0xff]  ;;  %v789_v25 = vld [vmem:[#allocation13 + $0x18] sm:$0xff] }
 0x34e   :  { %1206 = vmatprep.subr.mxu1 %v1468_v0  ;;  %1173 = vmatprep.subr.mxu0 %v1468_v0  ;;  %v788_v26 = vld [vmem:[#allocation13 + $0x10] sm:$0xff]  ;;  %v787_v27 = vld [vmem:[#allocation13 + $0x8] sm:$0xff]  ;;  %v786_v28 = vld [vmem:[#allocation13] sm:$0xff] }
 0x34f   :  { %1207 = vmatpush3.msra.mxu1 %v622_v51  ;;  %1174 = vmatpush3.msra.mxu0 %v637_v52  ;;  %v613_v29 = vld [vmem:[#allocation4] sm:$0xff]  ;;  %v895_v31 = vld [vmem:[#allocation15 + $0x70] sm:$0xff]  ;;  %v894_v32 = vld [vmem:[#allocation15 + $0x68] sm:$0xff] }
 0x350   :  { %1208 = vmatprep.subr.mxu1 %v1468_v0  ;;  %1175 = vmatprep.subr.mxu0 %v1468_v0  ;;  %v896_v30 = vld [vmem:[#allocation15 + $0x78] sm:$0xff]  ;;  %v893_v33 = vld [vmem:[#allocation15 + $0x60] sm:$0xff]  ;;  %v891_v35 = vld [vmem:[#allocation15 + $0x50] sm:$0xff] }
 0x351   :  { %1209 = vmatpush3.msra.mxu1 %v621_v53  ;;  %1176 = vmatpush3.msra.mxu0 %v636_v54  ;;  %v892_v34 = vld [vmem:[#allocation15 + $0x58] sm:$0xff]  ;;  %v890_v15 = vld [vmem:[#allocation15 + $0x48] sm:$0xff]  ;;  %v889_v36 = vld [vmem:[#allocation15 + $0x40] sm:$0xff] }
 0x352   :  { %1210 = vmatprep.subr.mxu1 %v1468_v0  ;;  %1177 = vmatprep.subr.mxu0 %v1468_v0  ;;  %v888_v60 = vld [vmem:[#allocation15 + $0x38] sm:$0xff]  ;;  %v887_v62 = vld [vmem:[#allocation15 + $0x30] sm:$0xff]  ;;  %v886_v1 = vld [vmem:[#allocation15 + $0x28] sm:$0xff] }
 0x353   :  { %1211 = vmatpush3.msra.mxu1 %v620_v55  ;;  %1178 = vmatpush3.msra.mxu0 %v635_v56  ;;  %v885_v37 = vld [vmem:[#allocation15 + $0x20] sm:$0xff]  ;;  %v884_v38 = vld [vmem:[#allocation15 + $0x18] sm:$0xff]  ;;  %v883_v39 = vld [vmem:[#allocation15 + $0x10] sm:$0xff] }
 0x354   :  { %1212 = vmatprep.subr.mxu1 %v1468_v0  ;;  %1179 = vmatprep.subr.mxu0 %v1468_v0  ;;  %v882_v40 = vld [vmem:[#allocation15 + $0x8] sm:$0xff]  ;;  %v881_v42 = vld [vmem:[#allocation15] sm:$0xff] }
 0x355   :  { %1213 = vmatpush3.msra.mxu1 %v619_v57  ;;  %1180 = vmatpush3.msra.mxu0 %v634_v58  ;;  %v1014_v48 = vld [vmem:[%s1755_s10] ss:$0 sm:$0xff]  ;;  %s1474_s10 = smov [#allocation16]  }
 0x356   :  { %1214 = vmatprep.subr.mxu1 %v1468_v0  ;;  %1181 = vmatprep.subr.mxu0 %v1468_v0  ;;  %v1015_v52 = vld [vmem:[%s1757_s12] ss:$0 sm:$0xff]  ;;  %s991_s14 = sshll.u32 %s1474_s10, 4  ;;  %s992_s14 = int_to_ptr.vmem [resolvable:$true] %s991_s14 }
 0x357   :  { %1215 = vmatpush3.msra.mxu1 %v618_v59  ;;  %1182 = vmatpush3.msra.mxu0 %v633_v61  ;;  %s1430_s12 = scalar_lea.vmem %s992_s14, 128  ;;  %p1435_p4 = scmp.lt.s32.totalorder %s992_s14, %s992_s14 }
 0x358   :  { %1216 = vmatprep.subr.mxu1 %v1468_v0  ;;  %1183 = vmatprep.subr.mxu0 %v1468_v0  ;;  %p1431_p3 = scmp.ne.s32.totalorder %s992_s14, %s1430_s12  ;;  %p1436_p5 = scmp.lt.s32.totalorder %s1430_s12, %s1430_s12 }
 0x359   :  { %1217 = vmatpush3.msra.mxu1 %v617_v63  ;;  %1184 = vmatpush3.msra.mxu0 %v632_v2 }
 0x35a   :  { %1218 = vmatprep.subr.mxu1 %v1468_v0  ;;  %1185 = vmatprep.subr.mxu0 %v1468_v0  ;;  %p1437_p6 = por %p1436_p5, %p1435_p4 }
 0x35b   :  { %1219 = vmatpush3.msra.mxu1 %v616_v3  ;;  %1186 = vmatpush3.msra.mxu0 %v631_v4 }
 0x35c   :  { %1220 = vmatprep.subr.mxu1 %v1468_v0  ;;  %1187 = vmatprep.subr.mxu0 %v1468_v0  ;;  %p1438_p7 = pnand %p1437_p6, %p1431_p3 }
 0x35d   :  { %1221 = vmatpush3.msra.mxu1 %v615_v5  ;;  %1188 = vmatpush3.msra.mxu0 %v630_v6 }
 0x35e   :  { %1222 = vmatprep.subr.mxu1 %v1468_v0  ;;  %1189 = vmatprep.mubr.msk.f32.mxu0 %vm1469_vm1, %v1468_v0 }
 0x35f   :  { %1223 = vmatpush3.msra.mxu1 %v614_v7  ;;  %1224 = vmatprep.mubr.msk.f32.mxu1 %vm1469_vm1, %v1468_v0 }
 0x360   :  { %1227 = vmatprep.subr.mxu0 %v1468_v0  ;;  %1225 = vmatmul.mubr.f32.vlgmr.msra.gmra.mxu1 %v604_v8 }
 0x361   :  { %1262 = vmatprep.subr.mxu1 %v1468_v0  ;;  %1294 = vmatprep.mubr.msk.f32.mxu1 %vm1469_vm1, %v1468_v0 }
 0x362   :  { %1263 = vmatpush3.msra.mxu1 %v896_v30 }
 0x363   :  { %1264 = vmatprep.subr.mxu1 %v1468_v0 }
 0x364   :  { %1265 = vmatpush3.msra.mxu1 %v895_v31 }
 0x365   :  { %1266 = vmatprep.subr.mxu1 %v1468_v0 }
 0x366   :  { %1267 = vmatpush3.msra.mxu1 %v894_v32 }
 0x367   :  { %1268 = vmatprep.subr.mxu1 %v1468_v0 }
 0x368   :  { %1269 = vmatpush3.msra.mxu1 %v893_v33 }
 0x369   :  { %1270 = vmatprep.subr.mxu1 %v1468_v0 }
 0x36a   :  { %1271 = vmatpush3.msra.mxu1 %v892_v34 }
 0x36b   :  { %1272 = vmatprep.subr.mxu1 %v1468_v0 }
 0x36c   :  { %1273 = vmatpush3.msra.mxu1 %v891_v35 }
 0x36d   :  { %1274 = vmatprep.subr.mxu1 %v1468_v0 }
 0x36e   :  { %1275 = vmatpush3.msra.mxu1 %v890_v15 }
 0x36f   :  { %1276 = vmatprep.subr.mxu1 %v1468_v0 }
 0x370   :  { %1277 = vmatpush3.msra.mxu1 %v889_v36 }
 0x371   :  { %1278 = vmatprep.subr.mxu1 %v1468_v0 }
 0x372   :  { %1279 = vmatpush3.msra.mxu1 %v888_v60 }
 0x373   :  { %1280 = vmatprep.subr.mxu1 %v1468_v0 }
 0x374   :  { %1281 = vmatpush3.msra.mxu1 %v887_v62 }
 0x375   :  { %1282 = vmatprep.subr.mxu1 %v1468_v0 }
 0x376   :  { %1283 = vmatpush3.msra.mxu1 %v886_v1 }
 0x377   :  { %1284 = vmatprep.subr.mxu1 %v1468_v0 }
 0x378   :  { %1285 = vmatpush3.msra.mxu1 %v885_v37 }
 0x379   :  { %1286 = vmatprep.subr.mxu1 %v1468_v0 }
 0x37a   :  { %1287 = vmatpush3.msra.mxu1 %v884_v38 }
 0x37b   :  { %1288 = vmatprep.subr.mxu1 %v1468_v0 }
 0x37c   :  { %1289 = vmatpush3.msra.mxu1 %v883_v39 }
 0x37d   :  { %1290 = vmatprep.subr.mxu1 %v1468_v0 }
 0x37e   :  { %1291 = vmatpush3.msra.mxu1 %v882_v40 }
 0x37f   :  { %1292 = vmatprep.subr.mxu1 %v1468_v0 }
 0x380   :  { %1293 = vmatpush3.msra.mxu1 %v881_v42 }
 0x3bb   :  { %v610_v10 = vpop.permute.xlu0 %609 }
 0x3bc   :  { %v612_v11 = vmul.f32 %v610_v10, %v605_v9 }
 0x3be   :  { %1190 = vmatmul.mubr.f32.vlgmr.msra.gmra.mxu0 %v612_v11 }
 0x3bf   :  { %1228 = vmatpush3.msra.mxu0 %v801_v12  ;;  %1259 = vmatprep.mubr.msk.f32.mxu0 %vm1469_vm1, %v1468_v0 }
 0x3c0   :  { %1229 = vmatprep.subr.mxu0 %v1468_v0 }
 0x3c1   :  { %1230 = vmatpush3.msra.mxu0 %v800_v13 }
 0x3c2   :  { %1231 = vmatprep.subr.mxu0 %v1468_v0 }
 0x3c3   :  { %1232 = vmatpush3.msra.mxu0 %v799_v14 }
 0x3c4   :  { %1233 = vmatprep.subr.mxu0 %v1468_v0 }
 0x3c5   :  { %1234 = vmatpush3.msra.mxu0 %v798_v16 }
 0x3c6   :  { %1235 = vmatprep.subr.mxu0 %v1468_v0 }
 0x3c7   :  { %1236 = vmatpush3.msra.mxu0 %v797_v17 }
 0x3c8   :  { %1237 = vmatprep.subr.mxu0 %v1468_v0 }
 0x3c9   :  { %1238 = vmatpush3.msra.mxu0 %v796_v18 }
 0x3ca   :  { %1239 = vmatprep.subr.mxu0 %v1468_v0 }
 0x3cb   :  { %1240 = vmatpush3.msra.mxu0 %v795_v19 }
 0x3cc   :  { %1241 = vmatprep.subr.mxu0 %v1468_v0 }
 0x3cd   :  { %1242 = vmatpush3.msra.mxu0 %v794_v20 }
 0x3ce   :  { %1243 = vmatprep.subr.mxu0 %v1468_v0 }
 0x3cf   :  { %1244 = vmatpush3.msra.mxu0 %v793_v21 }
 0x3d0   :  { %1245 = vmatprep.subr.mxu0 %v1468_v0 }
 0x3d1   :  { %1246 = vmatpush3.msra.mxu0 %v792_v22 }
 0x3d2   :  { %1247 = vmatprep.subr.mxu0 %v1468_v0 }
 0x3d3   :  { %1248 = vmatpush3.msra.mxu0 %v791_v23 }
 0x3d4   :  { %1249 = vmatprep.subr.mxu0 %v1468_v0 }
 0x3d5   :  { %1250 = vmatpush3.msra.mxu0 %v790_v24 }
 0x3d6   :  { %1251 = vmatprep.subr.mxu0 %v1468_v0 }
 0x3d7   :  { %1252 = vmatpush3.msra.mxu0 %v789_v25 }
 0x3d8   :  { %1253 = vmatprep.subr.mxu0 %v1468_v0 }
 0x3d9   :  { %1254 = vmatpush3.msra.mxu0 %v788_v26 }
 0x3da   :  { %1255 = vmatprep.subr.mxu0 %v1468_v0 }
 0x3db   :  { %1256 = vmatpush3.msra.mxu0 %v787_v27 }
 0x3dc   :  { %1257 = vmatprep.subr.mxu0 %v1468_v0 }
 0x3dd   :  { %1258 = vmatpush3.msra.mxu0 %v786_v28 }
 0x3de   :  { %1260 = vmatmul.mubr.f32.vlgmr.msra.gmra.mxu0 %v613_v29 }
 0x420   :  { %v782_v41 = vpop.f32.mrf.mxu1 }
 0x422   :  { %v1226_v43 = vpop.f32.mrf.mxu1 }
 0x47e   :  { %v712_v44 = vpop.f32.mrf.mxu0 }
 0x47f   :  { %v783_v46 = vadd.f32 %v782_v41, %v712_v44 }
 0x480   :  { %v1191_v45 = vpop.f32.mrf.mxu0 }
 0x49e   :  { %v868_v47 = vpop.f32.mrf.mxu0 }
 0x49f   :  { %v872_v49 = vadd.f32 %v868_v47, %v783_v46 }
 0x4a0   :  { %v1261_v50 = vpop.f32.mrf.mxu0 }
 0x4a1   :  { %v880_v51 = vadd.f32 %v1014_v48, %v872_v49 }
 0x4a3   :  { %1295 = vmatmul.mubr.f32.vlgmr.msra.gmra.mxu1 %v880_v51 }
 0x563   :  { %v970_v0 = vpop.f32.mrf.mxu1 }
 0x564   :  { %v971_v53 = vadd.f32 %v1015_v52, %v970_v0 }
 0x565   :  { %v1296_v54 = vpop.f32.mrf.mxu1 }
 0x566   :  { %974 = vmax.xlane.f32.xlu0 %v971_v53 }
 0x5ef   :  { %v975_v55 = vpop.xlane.xlu0 %974 }
 0x5f0   :  { %v976_v56 = vsub.f32 %v971_v53, %v975_v55 }
 0x5f2   :  { %v977_v57 = vmul.f32 1.442695, %v976_v56 }
 0x5f4   :  { %1314 = vpow2.f32 %v977_v57 }
 0x601   :  { %v1315_v58 = vpop.eup %1314 }
 0x602   :  { %979 = vadd.xlane.f32.xlu1 %v1315_v58 }
 0x68b   :  { %v980_v59 = vpop.xlane.xlu1 %979 }
 0x68c   :  { %1316 = vlog2.f32 %v980_v59 }
 0x699   :  { %v1317_v61 = vpop.eup %1316 }
 0x69a   :  { %v982_v63 = vmul.f32 0.6931472, %v1317_v61 }
 0x69c   :  { %v983_v2 = vsub.f32 %v976_v56, %v982_v63 }
 0x69e   :  { %984 = vst [vmem:[#allocation16] sm:$0xff] %v983_v2 }
 0x69f   :  { %1441 = shalt.err (!%p1438_p7)
}
 0x6a0   :  { %994 = dma.vmem_to_hbm [thread:$0]  %s992_s14, 128, %s1758_s13, [#allocation9]  }
 0x6a1   :  { %1458 = dma.done.wait [#allocation9], 128  }
 0x6a2   :  { %1459 = vsyncadd [#allocation9], 4294967168 }
 0x6a3   :  { %998 = vsyncpa [#allocation8], 1 }
 0x6a4   :  { %999 = vsyncpa [#allocation11], 1 }
 0x6a5   :  { %1000 = vsyncpa [#allocation14], 1 }
 0x6a6   :  { %1001 = vsyncpa [#allocation9], 1 }

</bundles_post_ra>
